<compile_context>
chip_gen: v5e
topology: v5e:2x2
jax: 0.10.0
libtpu: 0.0.40
codegen_flags: <defaults>
</compile_context>

<pallas_src>
import numpy as np
import jax
import jax.numpy as jnp
from jax.experimental import pallas as pl
from jax.experimental.pallas import tpu as pltpu

NUM_ITERS = 2000   # fixed dual-FISTA iteration count
UNROLL = 16        # inner-loop unroll factor


def _make_qp_kernel(c_ramp, n_real, num_iters, unroll):
    c_ramp = float(c_ramp)
    n_real = int(n_real)

    def kernel(beta_ref, z0_ref, mu_ref, dg_ref, d2g_ref, out_ref):
        # transposed tiles: (n_pad, bt) -- horizon on sublanes, batch on lanes
        z0 = z0_ref[...]
        mu = mu_ref[...]
        dg = dg_ref[...]
        d2g = d2g_ref[...]
        n_pad, bt = z0.shape

        q = jnp.maximum(d2g + 1.0, 1e-6)          # clamp keeps Q positive-definite
        p = dg - d2g * z0 - mu
        # exact reciprocal: runs once outside the 2000-step loop, so it is free
        neg_inv_q = -pl.reciprocal(q, approx=False)

        row = jax.lax.broadcasted_iota(jnp.int32, (n_pad, 1), 0)
        mask = (row < (n_real - 1)).astype(jnp.float32)   # real constraint rows

        # step size 1/L with L = lambda_max(G Q^-1 G^T) <= 8 / min_j q_j,
        # excluding padded horizon rows from the per-column min
        q_for_min = jnp.where(row < n_real, q, 1e30)
        alpha = 0.125 * jnp.min(q_for_min, axis=0, keepdims=True)   # (1, bt)

        # hoist all loop-invariant broadcasts out of the iteration loop
        mask_b = jnp.broadcast_to(mask, (n_pad, bt))                 # (n_pad, bt)
        am = mask * alpha                                            # (n_pad, bt)
        ac_b = jnp.broadcast_to(alpha * c_ramp, (n_pad, bt))         # alpha * h

        zeros = jnp.zeros_like(z0)

        def one_step(i, lam_p, lam_m, y_p, y_m):
            # G^T y == w_j - w_{j-1},  w = y_plus - y_minus (masked -> padded
            # rows contribute exactly 0, robust to roll wrap-around)
            w = mask_b * (y_p - y_m)
            gty = w - pltpu.roll(w, shift=1, axis=0)
            # primal minimizer at the dual momentum point
            z = neg_inv_q * (p + gty)
            # G z == [dz; -dz],  dz_j = z_j - z_{j+1}; am folds alpha and mask
            adz = am * (z - pltpu.roll(z, shift=n_pad - 1, axis=0))
            # projected dual ascent step (h = c_ramp)
            lam_p_new = jnp.maximum(y_p + adz - ac_b, 0.0)
            lam_m_new = jnp.maximum(y_m - adz - ac_b, 0.0)
            # FISTA momentum with host-precomputed beta_i from SMEM:
            # y = (1+beta)*lam_new - beta*lam  (beta*lam is off the crit path)
            beta = beta_ref[i]
            beta1 = beta + 1.0
            y_p_new = beta1 * lam_p_new - beta * lam_p
            y_m_new = beta1 * lam_m_new - beta * lam_m
            return lam_p_new, lam_m_new, y_p_new, y_m_new

        def body(k, carry):
            lam_p, lam_m, y_p, y_m = carry
            base = k * unroll
            for u in range(unroll):
                lam_p, lam_m, y_p, y_m = one_step(base + u, lam_p, lam_m, y_p, y_m)
            return lam_p, lam_m, y_p, y_m

        lam_p, lam_m, _, _ = jax.lax.fori_loop(
            0, num_iters // unroll, body, (zeros, zeros, zeros, zeros))

        # primal recovery from the converged multipliers
        w = mask_b * (lam_p - lam_m)
        gty = w - pltpu.roll(w, shift=1, axis=0)
        out_ref[...] = (neg_inv_q * (p + gty)).astype(out_ref.dtype)

    return kernel


def solve_scheduling_qp(z0, mu, dg, d2g, c_ramp,
                        num_iters=NUM_ITERS, unroll=UNROLL):
    """Pallas equivalent of SolveSchedulingQP.forward (float32)."""
    B, n = z0.shape
    z0 = z0.astype(jnp.float32)
    mu = mu.astype(jnp.float32)
    dg = dg.astype(jnp.float32)
    d2g = d2g.astype(jnp.float32)

    if n < 2:   # no ramp constraints: unconstrained diagonal QP
        q = jnp.maximum(d2g + 1.0, 1e-6)
        return -(dg - d2g * z0 - mu) / q

    assert num_iters % unroll == 0

    # data-independent FISTA momentum coefficients beta_k = (t_k - 1)/t_{k+1}
    t = 1.0
    betas = np.empty((num_iters,), np.float32)
    for k in range(num_iters):
        t_next = 0.5 * (1.0 + np.sqrt(1.0 + 4.0 * t * t))
        betas[k] = (t - 1.0) / t_next
        t = t_next
    betas = jnp.asarray(betas)

    # pad horizon to a multiple of 8 so both sublane rolls are aligned rotates
    n_pad = max(8, ((n + 7) // 8) * 8)
    # lane-dense batch tile: 256 lanes (2 f32 vregs per op) when the horizon is
    # small, 128 otherwise to keep vreg pressure down; pad batch to a multiple
    # of the tile so vregs are full and the output store is unmasked.
    # TODO(synk): on v7x, padding to an even number of tiles would load both
    # TensorCores; not done here to avoid doubling serial work on v5e/v6e.
    bt = 256 if n_pad <= 16 else 128
    B_pad = ((B + bt - 1) // bt) * bt

    def pad_t(x):
        return jnp.pad(x, ((0, B_pad - B), (0, n_pad - n))).T   # (n_pad, B_pad)

    z0_t, mu_t, dg_t, d2g_t = (pad_t(x) for x in (z0, mu, dg, d2g))

    grid = (B_pad // bt,)
    vspec = pl.BlockSpec((n_pad, bt), lambda i: (0, i))
    out_t = pl.pallas_call(
        _make_qp_kernel(c_ramp, n, num_iters, unroll),
        out_shape=jax.ShapeDtypeStruct((n_pad, B_pad), jnp.float32),
        grid=grid,
        in_specs=[
            pl.BlockSpec(memory_space=pltpu.MemorySpace.SMEM),  # betas table
            vspec, vspec, vspec, vspec,
        ],
        out_specs=vspec,
        compiler_params=pltpu.CompilerParams(
            dimension_semantics=("parallel",)),
    )(betas, z0_t, mu_t, dg_t, d2g_t)
    return out_t[:n, :B].T


def _numpy_reference(z0, mu, dg, d2g, c_ramp, num_iters=NUM_ITERS):
    """float64 dense-matvec FISTA reference (same algorithm) for checking."""
    z0, mu, dg, d2g = (np.asarray(x, np.float64) for x in (z0, mu, dg, d2g))
    B, n = z0.shape
    D = np.eye(n - 1, n) - np.eye(n - 1, n, 1)
    G = np.vstack([D, -D])
    h = c_ramp * np.ones(2 * (n - 1))
    q = np.maximum(d2g + 1.0, 1e-6)
    p = dg - d2g * z0 - mu
    alpha = q.min(axis=1, keepdims=True) / 8.0
    lam = np.zeros((B, G.shape[0]))
    y = lam.copy()
    t = 1.0
    for _ in range(num_iters):
        z = -(p + y @ G) / q
        grad = z @ G.T - h
        lam_new = np.maximum(y + alpha * grad, 0.0)
        t_new = 0.5 * (1.0 + np.sqrt(1.0 + 4.0 * t * t))
        y = lam_new + ((t - 1.0) / t_new) * (lam_new - lam)
        lam, t = lam_new, t_new
    return -(p + lam @ G) / q


if __name__ == "__main__":
    # small shapes consistent with the module: nBatch=4, horizon n=8
    B, n = 4, 8
    c_ramp = 0.2

    key = jax.random.PRNGKey(0)
    k1, k2, k3, k4 = jax.random.split(key, 4)
    z0 = jax.random.normal(k1, (B, n), jnp.float32)
    mu = 0.1 * jax.random.normal(k2, (B, n), jnp.float32)
    dg = jax.random.normal(k3, (B, n), jnp.float32)
    d2g = jax.random.uniform(k4, (B, n), jnp.float32)   # nonnegative curvature

    out = solve_scheduling_qp(z0, mu, dg, d2g, c_ramp)
    out = jax.block_until_ready(out)
    out_np = np.asarray(out)

    # 1) finite
    assert np.all(np.isfinite(out_np)), "non-finite output"
    # 2) approximately feasible: |z_j - z_{j+1}| <= c_ramp
    diffs = out_np[:, :-1] - out_np[:, 1:]
    max_violation = float(np.max(np.abs(diffs)) - c_ramp)
    assert max_violation < 5e-2, f"ramp constraint violated by {max_violation}"
    # 3) matches a float64 dense-matvec reference of the same dual solve
    ref = _numpy_reference(np.asarray(z0), np.asarray(mu), np.asarray(dg),
                           np.asarray(d2g), c_ramp)
    max_err = float(np.max(np.abs(out_np - ref)))
    assert max_err < 5e-2, f"mismatch vs reference: {max_err}"

    print("KERNEL_OK")
</pallas_src>

<mosaic_0001>
module attributes {stable_mosaic.version = 11 : i64} {
  func.func @kernel(%arg0: i32, %arg1: memref<2000xf32, #tpu.memory_space<smem>>, %arg2: memref<8x256xf32, #tpu.memory_space<vmem>>, %arg3: memref<8x256xf32, #tpu.memory_space<vmem>>, %arg4: memref<8x256xf32, #tpu.memory_space<vmem>>, %arg5: memref<8x256xf32, #tpu.memory_space<vmem>>, %arg6: memref<8x256xf32, #tpu.memory_space<vmem>>) attributes {dimension_semantics = [#tpu.dimension_semantics<parallel>], iteration_bounds = array<i64: 1>, scalar_prefetch = 0 : i64, scratch_operands = 0 : i64, tpu.core_type = #tpu.core_type<tc>, window_params = [{transform_indices = @transform_0, window_bounds = array<i64: 2000>}, {transform_indices = @transform_1, window_bounds = array<i64: 8, 256>}, {transform_indices = @transform_2, window_bounds = array<i64: 8, 256>}, {transform_indices = @transform_3, window_bounds = array<i64: 8, 256>}, {transform_indices = @transform_4, window_bounds = array<i64: 8, 256>}, {transform_indices = @transform_5, window_bounds = array<i64: 8, 256>}]} {
    %c0 = arith.constant 0 : index
    %c0_0 = arith.constant 0 : index
    %0 = vector.load %arg2[%c0, %c0_0] : memref<8x256xf32, #tpu.memory_space<vmem>>, vector<8x256xf32>
    %c0_1 = arith.constant 0 : index
    %c0_2 = arith.constant 0 : index
    %1 = vector.load %arg3[%c0_1, %c0_2] : memref<8x256xf32, #tpu.memory_space<vmem>>, vector<8x256xf32>
    %c0_3 = arith.constant 0 : index
    %c0_4 = arith.constant 0 : index
    %2 = vector.load %arg4[%c0_3, %c0_4] : memref<8x256xf32, #tpu.memory_space<vmem>>, vector<8x256xf32>
    %c0_5 = arith.constant 0 : index
    %c0_6 = arith.constant 0 : index
    %3 = vector.load %arg5[%c0_5, %c0_6] : memref<8x256xf32, #tpu.memory_space<vmem>>, vector<8x256xf32>
    %cst = arith.constant 1.000000e+00 : f32
    %4 = vector.broadcast %cst : f32 to vector<8x256xf32>
    %5 = arith.addf %3, %4 : vector<8x256xf32>
    %cst_7 = arith.constant 9.99999997E-7 : f32
    %6 = vector.broadcast %cst_7 : f32 to vector<8x256xf32>
    %7 = arith.maximumf %5, %6 : vector<8x256xf32>
    %8 = arith.mulf %3, %0 : vector<8x256xf32>
    %9 = arith.subf %2, %8 : vector<8x256xf32>
    %10 = arith.subf %9, %1 : vector<8x256xf32>
    %11 = tpu.reciprocal %7 : vector<8x256xf32> -> vector<8x256xf32>
    %cst_8 = arith.constant 0.000000e+00 : f32
    %12 = vector.broadcast %cst_8 : f32 to vector<8x256xf32>
    %13 = arith.subf %12, %11 : vector<8x256xf32>
    %14 = tpu.iota {dimensions = array<i32: 0>} : vector<8x1xi32>
    %c7_i32 = arith.constant 7 : i32
    %15 = vector.broadcast %c7_i32 : i32 to vector<8x1xi32>
    %16 = arith.cmpi slt, %14, %15 : vector<8x1xi32>
    %17 = arith.extui %16 : vector<8x1xi1> to vector<8x1xi32>
    %18 = arith.sitofp %17 : vector<8x1xi32> to vector<8x1xf32>
    %c8_i32 = arith.constant 8 : i32
    %19 = vector.broadcast %c8_i32 : i32 to vector<8x1xi32>
    %20 = arith.cmpi slt, %14, %19 : vector<8x1xi32>
    %cst_9 = arith.constant 1.000000e+30 : f32
    %21 = vector.shape_cast %20 : vector<8x1xi1> to vector<8x1xi1>
    %22 = vector.broadcast %21 : vector<8x1xi1> to vector<8x256xi1>
    %23 = vector.broadcast %cst_9 : f32 to vector<8x256xf32>
    %24 = arith.select %22, %7, %23 : vector<8x256xi1>, vector<8x256xf32>
    %cst_10 = arith.constant dense<0x7F800000> : vector<256xf32>
    %25 = vector.multi_reduction <minimumf>, %24, %cst_10 [0] : vector<8x256xf32> to vector<256xf32>
    %26 = vector.shape_cast %25 : vector<256xf32> to vector<1x256xf32>
    %cst_11 = arith.constant 1.250000e-01 : f32
    %27 = vector.broadcast %cst_11 : f32 to vector<1x256xf32>
    %28 = arith.mulf %27, %26 : vector<1x256xf32>
    %29 = vector.shape_cast %18 : vector<8x1xf32> to vector<8x1xf32>
    %30 = vector.broadcast %29 : vector<8x1xf32> to vector<8x256xf32>
    %31 = vector.broadcast %18 : vector<8x1xf32> to vector<8x256xf32>
    %32 = vector.broadcast %28 : vector<1x256xf32> to vector<8x256xf32>
    %33 = arith.mulf %31, %32 : vector<8x256xf32>
    %cst_12 = arith.constant 2.000000e-01 : f32
    %34 = vector.broadcast %cst_12 : f32 to vector<1x256xf32>
    %35 = arith.mulf %28, %34 : vector<1x256xf32>
    %36 = vector.shape_cast %35 : vector<1x256xf32> to vector<1x256xf32>
    %37 = vector.broadcast %36 : vector<1x256xf32> to vector<8x256xf32>
    %cst_13 = arith.constant 0.000000e+00 : f32
    %38 = vector.broadcast %cst_13 : f32 to vector<8x256xf32>
    %c0_i32 = arith.constant 0 : i32
    %c125_i32 = arith.constant 125 : i32
    %39 = arith.addi %c0_i32, %c125_i32 : i32
    %c1_i32 = arith.constant 1 : i32
    %40:4 = scf.for %arg7 = %c0_i32 to %39 step %c1_i32 iter_args(%arg8 = %38, %arg9 = %38, %arg10 = %38, %arg11 = %38) -> (vector<8x256xf32>, vector<8x256xf32>, vector<8x256xf32>, vector<8x256xf32>)  : i32 {
      %c16_i32 = arith.constant 16 : i32
      %48 = arith.muli %arg7, %c16_i32 : i32
      %c0_i32_18 = arith.constant 0 : i32
      %49 = arith.addi %48, %c0_i32_18 : i32
      %50 = arith.subf %arg10, %arg11 : vector<8x256xf32>
      %51 = arith.mulf %30, %50 : vector<8x256xf32>
      %c1_i32_19 = arith.constant 1 : i32
      %52 = tpu.dynamic_rotate %51 by %c1_i32_19 dim 0 : vector<8x256xf32>, i32 -> vector<8x256xf32>
      %53 = arith.subf %51, %52 : vector<8x256xf32>
      %54 = arith.addf %10, %53 : vector<8x256xf32>
      %55 = arith.mulf %13, %54 : vector<8x256xf32>
      %c7_i32_20 = arith.constant 7 : i32
      %56 = tpu.dynamic_rotate %55 by %c7_i32_20 dim 0 : vector<8x256xf32>, i32 -> vector<8x256xf32>
      %57 = arith.subf %55, %56 : vector<8x256xf32>
      %58 = arith.mulf %33, %57 : vector<8x256xf32>
      %59 = arith.addf %arg10, %58 : vector<8x256xf32>
      %60 = arith.subf %59, %37 : vector<8x256xf32>
      %cst_21 = arith.constant 0.000000e+00 : f32
      %61 = vector.broadcast %cst_21 : f32 to vector<8x256xf32>
      %62 = arith.maximumf %60, %61 : vector<8x256xf32>
      %63 = arith.subf %arg11, %58 : vector<8x256xf32>
      %64 = arith.subf %63, %37 : vector<8x256xf32>
      %cst_22 = arith.constant 0.000000e+00 : f32
      %65 = vector.broadcast %cst_22 : f32 to vector<8x256xf32>
      %66 = arith.maximumf %64, %65 : vector<8x256xf32>
      %67 = arith.index_cast %49 : i32 to index
      %68 = memref.load %arg1[%67] : memref<2000xf32, #tpu.memory_space<smem>>
      %cst_23 = arith.constant 1.000000e+00 : f32
      %69 = arith.addf %68, %cst_23 : f32
      %70 = vector.broadcast %69 : f32 to vector<8x256xf32>
      %71 = arith.mulf %70, %62 : vector<8x256xf32>
      %72 = vector.broadcast %68 : f32 to vector<8x256xf32>
      %73 = arith.mulf %72, %arg8 : vector<8x256xf32>
      %74 = arith.subf %71, %73 : vector<8x256xf32>
      %75 = vector.broadcast %69 : f32 to vector<8x256xf32>
      %76 = arith.mulf %75, %66 : vector<8x256xf32>
      %77 = vector.broadcast %68 : f32 to vector<8x256xf32>
      %78 = arith.mulf %77, %arg9 : vector<8x256xf32>
      %79 = arith.subf %76, %78 : vector<8x256xf32>
      %c1_i32_24 = arith.constant 1 : i32
      %80 = arith.addi %48, %c1_i32_24 : i32
      %81 = arith.subf %74, %79 : vector<8x256xf32>
      %82 = arith.mulf %30, %81 : vector<8x256xf32>
      %c1_i32_25 = arith.constant 1 : i32
      %83 = tpu.dynamic_rotate %82 by %c1_i32_25 dim 0 : vector<8x256xf32>, i32 -> vector<8x256xf32>
      %84 = arith.subf %82, %83 : vector<8x256xf32>
      %85 = arith.addf %10, %84 : vector<8x256xf32>
      %86 = arith.mulf %13, %85 : vector<8x256xf32>
      %c7_i32_26 = arith.constant 7 : i32
      %87 = tpu.dynamic_rotate %86 by %c7_i32_26 dim 0 : vector<8x256xf32>, i32 -> vector<8x256xf32>
      %88 = arith.subf %86, %87 : vector<8x256xf32>
      %89 = arith.mulf %33, %88 : vector<8x256xf32>
      %90 = arith.addf %74, %89 : vector<8x256xf32>
      %91 = arith.subf %90, %37 : vector<8x256xf32>
      %cst_27 = arith.constant 0.000000e+00 : f32
      %92 = vector.broadcast %cst_27 : f32 to vector<8x256xf32>
      %93 = arith.maximumf %91, %92 : vector<8x256xf32>
      %94 = arith.subf %79, %89 : vector<8x256xf32>
      %95 = arith.subf %94, %37 : vector<8x256xf32>
      %cst_28 = arith.constant 0.000000e+00 : f32
      %96 = vector.broadcast %cst_28 : f32 to vector<8x256xf32>
      %97 = arith.maximumf %95, %96 : vector<8x256xf32>
      %98 = arith.index_cast %80 : i32 to index
      %99 = memref.load %arg1[%98] : memref<2000xf32, #tpu.memory_space<smem>>
      %cst_29 = arith.constant 1.000000e+00 : f32
      %100 = arith.addf %99, %cst_29 : f32
      %101 = vector.broadcast %100 : f32 to vector<8x256xf32>
      %102 = arith.mulf %101, %93 : vector<8x256xf32>
      %103 = vector.broadcast %99 : f32 to vector<8x256xf32>
      %104 = arith.mulf %103, %62 : vector<8x256xf32>
      %105 = arith.subf %102, %104 : vector<8x256xf32>
      %106 = vector.broadcast %100 : f32 to vector<8x256xf32>
      %107 = arith.mulf %106, %97 : vector<8x256xf32>
      %108 = vector.broadcast %99 : f32 to vector<8x256xf32>
      %109 = arith.mulf %108, %66 : vector<8x256xf32>
      %110 = arith.subf %107, %109 : vector<8x256xf32>
      %c2_i32 = arith.constant 2 : i32
      %111 = arith.addi %48, %c2_i32 : i32
      %112 = arith.subf %105, %110 : vector<8x256xf32>
      %113 = arith.mulf %30, %112 : vector<8x256xf32>
      %c1_i32_30 = arith.constant 1 : i32
      %114 = tpu.dynamic_rotate %113 by %c1_i32_30 dim 0 : vector<8x256xf32>, i32 -> vector<8x256xf32>
      %115 = arith.subf %113, %114 : vector<8x256xf32>
      %116 = arith.addf %10, %115 : vector<8x256xf32>
      %117 = arith.mulf %13, %116 : vector<8x256xf32>
      %c7_i32_31 = arith.constant 7 : i32
      %118 = tpu.dynamic_rotate %117 by %c7_i32_31 dim 0 : vector<8x256xf32>, i32 -> vector<8x256xf32>
      %119 = arith.subf %117, %118 : vector<8x256xf32>
      %120 = arith.mulf %33, %119 : vector<8x256xf32>
      %121 = arith.addf %105, %120 : vector<8x256xf32>
      %122 = arith.subf %121, %37 : vector<8x256xf32>
      %cst_32 = arith.constant 0.000000e+00 : f32
      %123 = vector.broadcast %cst_32 : f32 to vector<8x256xf32>
      %124 = arith.maximumf %122, %123 : vector<8x256xf32>
      %125 = arith.subf %110, %120 : vector<8x256xf32>
      %126 = arith.subf %125, %37 : vector<8x256xf32>
      %cst_33 = arith.constant 0.000000e+00 : f32
      %127 = vector.broadcast %cst_33 : f32 to vector<8x256xf32>
      %128 = arith.maximumf %126, %127 : vector<8x256xf32>
      %129 = arith.index_cast %111 : i32 to index
      %130 = memref.load %arg1[%129] : memref<2000xf32, #tpu.memory_space<smem>>
      %cst_34 = arith.constant 1.000000e+00 : f32
      %131 = arith.addf %130, %cst_34 : f32
      %132 = vector.broadcast %131 : f32 to vector<8x256xf32>
      %133 = arith.mulf %132, %124 : vector<8x256xf32>
      %134 = vector.broadcast %130 : f32 to vector<8x256xf32>
      %135 = arith.mulf %134, %93 : vector<8x256xf32>
      %136 = arith.subf %133, %135 : vector<8x256xf32>
      %137 = vector.broadcast %131 : f32 to vector<8x256xf32>
      %138 = arith.mulf %137, %128 : vector<8x256xf32>
      %139 = vector.broadcast %130 : f32 to vector<8x256xf32>
      %140 = arith.mulf %139, %97 : vector<8x256xf32>
      %141 = arith.subf %138, %140 : vector<8x256xf32>
      %c3_i32 = arith.constant 3 : i32
      %142 = arith.addi %48, %c3_i32 : i32
      %143 = arith.subf %136, %141 : vector<8x256xf32>
      %144 = arith.mulf %30, %143 : vector<8x256xf32>
      %c1_i32_35 = arith.constant 1 : i32
      %145 = tpu.dynamic_rotate %144 by %c1_i32_35 dim 0 : vector<8x256xf32>, i32 -> vector<8x256xf32>
      %146 = arith.subf %144, %145 : vector<8x256xf32>
      %147 = arith.addf %10, %146 : vector<8x256xf32>
      %148 = arith.mulf %13, %147 : vector<8x256xf32>
      %c7_i32_36 = arith.constant 7 : i32
      %149 = tpu.dynamic_rotate %148 by %c7_i32_36 dim 0 : vector<8x256xf32>, i32 -> vector<8x256xf32>
      %150 = arith.subf %148, %149 : vector<8x256xf32>
      %151 = arith.mulf %33, %150 : vector<8x256xf32>
      %152 = arith.addf %136, %151 : vector<8x256xf32>
      %153 = arith.subf %152, %37 : vector<8x256xf32>
      %cst_37 = arith.constant 0.000000e+00 : f32
      %154 = vector.broadcast %cst_37 : f32 to vector<8x256xf32>
      %155 = arith.maximumf %153, %154 : vector<8x256xf32>
      %156 = arith.subf %141, %151 : vector<8x256xf32>
      %157 = arith.subf %156, %37 : vector<8x256xf32>
      %cst_38 = arith.constant 0.000000e+00 : f32
      %158 = vector.broadcast %cst_38 : f32 to vector<8x256xf32>
      %159 = arith.maximumf %157, %158 : vector<8x256xf32>
      %160 = arith.index_cast %142 : i32 to index
      %161 = memref.load %arg1[%160] : memref<2000xf32, #tpu.memory_space<smem>>
      %cst_39 = arith.constant 1.000000e+00 : f32
      %162 = arith.addf %161, %cst_39 : f32
      %163 = vector.broadcast %162 : f32 to vector<8x256xf32>
      %164 = arith.mulf %163, %155 : vector<8x256xf32>
      %165 = vector.broadcast %161 : f32 to vector<8x256xf32>
      %166 = arith.mulf %165, %124 : vector<8x256xf32>
      %167 = arith.subf %164, %166 : vector<8x256xf32>
      %168 = vector.broadcast %162 : f32 to vector<8x256xf32>
      %169 = arith.mulf %168, %159 : vector<8x256xf32>
      %170 = vector.broadcast %161 : f32 to vector<8x256xf32>
      %171 = arith.mulf %170, %128 : vector<8x256xf32>
      %172 = arith.subf %169, %171 : vector<8x256xf32>
      %c4_i32 = arith.constant 4 : i32
      %173 = arith.addi %48, %c4_i32 : i32
      %174 = arith.subf %167, %172 : vector<8x256xf32>
      %175 = arith.mulf %30, %174 : vector<8x256xf32>
      %c1_i32_40 = arith.constant 1 : i32
      %176 = tpu.dynamic_rotate %175 by %c1_i32_40 dim 0 : vector<8x256xf32>, i32 -> vector<8x256xf32>
      %177 = arith.subf %175, %176 : vector<8x256xf32>
      %178 = arith.addf %10, %177 : vector<8x256xf32>
      %179 = arith.mulf %13, %178 : vector<8x256xf32>
      %c7_i32_41 = arith.constant 7 : i32
      %180 = tpu.dynamic_rotate %179 by %c7_i32_41 dim 0 : vector<8x256xf32>, i32 -> vector<8x256xf32>
      %181 = arith.subf %179, %180 : vector<8x256xf32>
      %182 = arith.mulf %33, %181 : vector<8x256xf32>
      %183 = arith.addf %167, %182 : vector<8x256xf32>
      %184 = arith.subf %183, %37 : vector<8x256xf32>
      %cst_42 = arith.constant 0.000000e+00 : f32
      %185 = vector.broadcast %cst_42 : f32 to vector<8x256xf32>
      %186 = arith.maximumf %184, %185 : vector<8x256xf32>
      %187 = arith.subf %172, %182 : vector<8x256xf32>
      %188 = arith.subf %187, %37 : vector<8x256xf32>
      %cst_43 = arith.constant 0.000000e+00 : f32
      %189 = vector.broadcast %cst_43 : f32 to vector<8x256xf32>
      %190 = arith.maximumf %188, %189 : vector<8x256xf32>
      %191 = arith.index_cast %173 : i32 to index
      %192 = memref.load %arg1[%191] : memref<2000xf32, #tpu.memory_space<smem>>
      %cst_44 = arith.constant 1.000000e+00 : f32
      %193 = arith.addf %192, %cst_44 : f32
      %194 = vector.broadcast %193 : f32 to vector<8x256xf32>
      %195 = arith.mulf %194, %186 : vector<8x256xf32>
      %196 = vector.broadcast %192 : f32 to vector<8x256xf32>
      %197 = arith.mulf %196, %155 : vector<8x256xf32>
      %198 = arith.subf %195, %197 : vector<8x256xf32>
      %199 = vector.broadcast %193 : f32 to vector<8x256xf32>
      %200 = arith.mulf %199, %190 : vector<8x256xf32>
      %201 = vector.broadcast %192 : f32 to vector<8x256xf32>
      %202 = arith.mulf %201, %159 : vector<8x256xf32>
      %203 = arith.subf %200, %202 : vector<8x256xf32>
      %c5_i32 = arith.constant 5 : i32
      %204 = arith.addi %48, %c5_i32 : i32
      %205 = arith.subf %198, %203 : vector<8x256xf32>
      %206 = arith.mulf %30, %205 : vector<8x256xf32>
      %c1_i32_45 = arith.constant 1 : i32
      %207 = tpu.dynamic_rotate %206 by %c1_i32_45 dim 0 : vector<8x256xf32>, i32 -> vector<8x256xf32>
      %208 = arith.subf %206, %207 : vector<8x256xf32>
      %209 = arith.addf %10, %208 : vector<8x256xf32>
      %210 = arith.mulf %13, %209 : vector<8x256xf32>
      %c7_i32_46 = arith.constant 7 : i32
      %211 = tpu.dynamic_rotate %210 by %c7_i32_46 dim 0 : vector<8x256xf32>, i32 -> vector<8x256xf32>
      %212 = arith.subf %210, %211 : vector<8x256xf32>
      %213 = arith.mulf %33, %212 : vector<8x256xf32>
      %214 = arith.addf %198, %213 : vector<8x256xf32>
      %215 = arith.subf %214, %37 : vector<8x256xf32>
      %cst_47 = arith.constant 0.000000e+00 : f32
      %216 = vector.broadcast %cst_47 : f32 to vector<8x256xf32>
      %217 = arith.maximumf %215, %216 : vector<8x256xf32>
      %218 = arith.subf %203, %213 : vector<8x256xf32>
      %219 = arith.subf %218, %37 : vector<8x256xf32>
      %cst_48 = arith.constant 0.000000e+00 : f32
      %220 = vector.broadcast %cst_48 : f32 to vector<8x256xf32>
      %221 = arith.maximumf %219, %220 : vector<8x256xf32>
      %222 = arith.index_cast %204 : i32 to index
      %223 = memref.load %arg1[%222] : memref<2000xf32, #tpu.memory_space<smem>>
      %cst_49 = arith.constant 1.000000e+00 : f32
      %224 = arith.addf %223, %cst_49 : f32
      %225 = vector.broadcast %224 : f32 to vector<8x256xf32>
      %226 = arith.mulf %225, %217 : vector<8x256xf32>
      %227 = vector.broadcast %223 : f32 to vector<8x256xf32>
      %228 = arith.mulf %227, %186 : vector<8x256xf32>
      %229 = arith.subf %226, %228 : vector<8x256xf32>
      %230 = vector.broadcast %224 : f32 to vector<8x256xf32>
      %231 = arith.mulf %230, %221 : vector<8x256xf32>
      %232 = vector.broadcast %223 : f32 to vector<8x256xf32>
      %233 = arith.mulf %232, %190 : vector<8x256xf32>
      %234 = arith.subf %231, %233 : vector<8x256xf32>
      %c6_i32 = arith.constant 6 : i32
      %235 = arith.addi %48, %c6_i32 : i32
      %236 = arith.subf %229, %234 : vector<8x256xf32>
      %237 = arith.mulf %30, %236 : vector<8x256xf32>
      %c1_i32_50 = arith.constant 1 : i32
      %238 = tpu.dynamic_rotate %237 by %c1_i32_50 dim 0 : vector<8x256xf32>, i32 -> vector<8x256xf32>
      %239 = arith.subf %237, %238 : vector<8x256xf32>
      %240 = arith.addf %10, %239 : vector<8x256xf32>
      %241 = arith.mulf %13, %240 : vector<8x256xf32>
      %c7_i32_51 = arith.constant 7 : i32
      %242 = tpu.dynamic_rotate %241 by %c7_i32_51 dim 0 : vector<8x256xf32>, i32 -> vector<8x256xf32>
      %243 = arith.subf %241, %242 : vector<8x256xf32>
      %244 = arith.mulf %33, %243 : vector<8x256xf32>
      %245 = arith.addf %229, %244 : vector<8x256xf32>
      %246 = arith.subf %245, %37 : vector<8x256xf32>
      %cst_52 = arith.constant 0.000000e+00 : f32
      %247 = vector.broadcast %cst_52 : f32 to vector<8x256xf32>
      %248 = arith.maximumf %246, %247 : vector<8x256xf32>
      %249 = arith.subf %234, %244 : vector<8x256xf32>
      %250 = arith.subf %249, %37 : vector<8x256xf32>
      %cst_53 = arith.constant 0.000000e+00 : f32
      %251 = vector.broadcast %cst_53 : f32 to vector<8x256xf32>
      %252 = arith.maximumf %250, %251 : vector<8x256xf32>
      %253 = arith.index_cast %235 : i32 to index
      %254 = memref.load %arg1[%253] : memref<2000xf32, #tpu.memory_space<smem>>
      %cst_54 = arith.constant 1.000000e+00 : f32
      %255 = arith.addf %254, %cst_54 : f32
      %256 = vector.broadcast %255 : f32 to vector<8x256xf32>
      %257 = arith.mulf %256, %248 : vector<8x256xf32>
      %258 = vector.broadcast %254 : f32 to vector<8x256xf32>
      %259 = arith.mulf %258, %217 : vector<8x256xf32>
      %260 = arith.subf %257, %259 : vector<8x256xf32>
      %261 = vector.broadcast %255 : f32 to vector<8x256xf32>
      %262 = arith.mulf %261, %252 : vector<8x256xf32>
      %263 = vector.broadcast %254 : f32 to vector<8x256xf32>
      %264 = arith.mulf %263, %221 : vector<8x256xf32>
      %265 = arith.subf %262, %264 : vector<8x256xf32>
      %c7_i32_55 = arith.constant 7 : i32
      %266 = arith.addi %48, %c7_i32_55 : i32
      %267 = arith.subf %260, %265 : vector<8x256xf32>
      %268 = arith.mulf %30, %267 : vector<8x256xf32>
      %c1_i32_56 = arith.constant 1 : i32
      %269 = tpu.dynamic_rotate %268 by %c1_i32_56 dim 0 : vector<8x256xf32>, i32 -> vector<8x256xf32>
      %270 = arith.subf %268, %269 : vector<8x256xf32>
      %271 = arith.addf %10, %270 : vector<8x256xf32>
      %272 = arith.mulf %13, %271 : vector<8x256xf32>
      %c7_i32_57 = arith.constant 7 : i32
      %273 = tpu.dynamic_rotate %272 by %c7_i32_57 dim 0 : vector<8x256xf32>, i32 -> vector<8x256xf32>
      %274 = arith.subf %272, %273 : vector<8x256xf32>
      %275 = arith.mulf %33, %274 : vector<8x256xf32>
      %276 = arith.addf %260, %275 : vector<8x256xf32>
      %277 = arith.subf %276, %37 : vector<8x256xf32>
      %cst_58 = arith.constant 0.000000e+00 : f32
      %278 = vector.broadcast %cst_58 : f32 to vector<8x256xf32>
      %279 = arith.maximumf %277, %278 : vector<8x256xf32>
      %280 = arith.subf %265, %275 : vector<8x256xf32>
      %281 = arith.subf %280, %37 : vector<8x256xf32>
      %cst_59 = arith.constant 0.000000e+00 : f32
      %282 = vector.broadcast %cst_59 : f32 to vector<8x256xf32>
      %283 = arith.maximumf %281, %282 : vector<8x256xf32>
      %284 = arith.index_cast %266 : i32 to index
      %285 = memref.load %arg1[%284] : memref<2000xf32, #tpu.memory_space<smem>>
      %cst_60 = arith.constant 1.000000e+00 : f32
      %286 = arith.addf %285, %cst_60 : f32
      %287 = vector.broadcast %286 : f32 to vector<8x256xf32>
      %288 = arith.mulf %287, %279 : vector<8x256xf32>
      %289 = vector.broadcast %285 : f32 to vector<8x256xf32>
      %290 = arith.mulf %289, %248 : vector<8x256xf32>
      %291 = arith.subf %288, %290 : vector<8x256xf32>
      %292 = vector.broadcast %286 : f32 to vector<8x256xf32>
      %293 = arith.mulf %292, %283 : vector<8x256xf32>
      %294 = vector.broadcast %285 : f32 to vector<8x256xf32>
      %295 = arith.mulf %294, %252 : vector<8x256xf32>
      %296 = arith.subf %293, %295 : vector<8x256xf32>
      %c8_i32_61 = arith.constant 8 : i32
      %297 = arith.addi %48, %c8_i32_61 : i32
      %298 = arith.subf %291, %296 : vector<8x256xf32>
      %299 = arith.mulf %30, %298 : vector<8x256xf32>
      %c1_i32_62 = arith.constant 1 : i32
      %300 = tpu.dynamic_rotate %299 by %c1_i32_62 dim 0 : vector<8x256xf32>, i32 -> vector<8x256xf32>
      %301 = arith.subf %299, %300 : vector<8x256xf32>
      %302 = arith.addf %10, %301 : vector<8x256xf32>
      %303 = arith.mulf %13, %302 : vector<8x256xf32>
      %c7_i32_63 = arith.constant 7 : i32
      %304 = tpu.dynamic_rotate %303 by %c7_i32_63 dim 0 : vector<8x256xf32>, i32 -> vector<8x256xf32>
      %305 = arith.subf %303, %304 : vector<8x256xf32>
      %306 = arith.mulf %33, %305 : vector<8x256xf32>
      %307 = arith.addf %291, %306 : vector<8x256xf32>
      %308 = arith.subf %307, %37 : vector<8x256xf32>
      %cst_64 = arith.constant 0.000000e+00 : f32
      %309 = vector.broadcast %cst_64 : f32 to vector<8x256xf32>
      %310 = arith.maximumf %308, %309 : vector<8x256xf32>
      %311 = arith.subf %296, %306 : vector<8x256xf32>
      %312 = arith.subf %311, %37 : vector<8x256xf32>
      %cst_65 = arith.constant 0.000000e+00 : f32
      %313 = vector.broadcast %cst_65 : f32 to vector<8x256xf32>
      %314 = arith.maximumf %312, %313 : vector<8x256xf32>
      %315 = arith.index_cast %297 : i32 to index
      %316 = memref.load %arg1[%315] : memref<2000xf32, #tpu.memory_space<smem>>
      %cst_66 = arith.constant 1.000000e+00 : f32
      %317 = arith.addf %316, %cst_66 : f32
      %318 = vector.broadcast %317 : f32 to vector<8x256xf32>
      %319 = arith.mulf %318, %310 : vector<8x256xf32>
      %320 = vector.broadcast %316 : f32 to vector<8x256xf32>
      %321 = arith.mulf %320, %279 : vector<8x256xf32>
      %322 = arith.subf %319, %321 : vector<8x256xf32>
      %323 = vector.broadcast %317 : f32 to vector<8x256xf32>
      %324 = arith.mulf %323, %314 : vector<8x256xf32>
      %325 = vector.broadcast %316 : f32 to vector<8x256xf32>
      %326 = arith.mulf %325, %283 : vector<8x256xf32>
      %327 = arith.subf %324, %326 : vector<8x256xf32>
      %c9_i32 = arith.constant 9 : i32
      %328 = arith.addi %48, %c9_i32 : i32
      %329 = arith.subf %322, %327 : vector<8x256xf32>
      %330 = arith.mulf %30, %329 : vector<8x256xf32>
      %c1_i32_67 = arith.constant 1 : i32
      %331 = tpu.dynamic_rotate %330 by %c1_i32_67 dim 0 : vector<8x256xf32>, i32 -> vector<8x256xf32>
      %332 = arith.subf %330, %331 : vector<8x256xf32>
      %333 = arith.addf %10, %332 : vector<8x256xf32>
      %334 = arith.mulf %13, %333 : vector<8x256xf32>
      %c7_i32_68 = arith.constant 7 : i32
      %335 = tpu.dynamic_rotate %334 by %c7_i32_68 dim 0 : vector<8x256xf32>, i32 -> vector<8x256xf32>
      %336 = arith.subf %334, %335 : vector<8x256xf32>
      %337 = arith.mulf %33, %336 : vector<8x256xf32>
      %338 = arith.addf %322, %337 : vector<8x256xf32>
      %339 = arith.subf %338, %37 : vector<8x256xf32>
      %cst_69 = arith.constant 0.000000e+00 : f32
      %340 = vector.broadcast %cst_69 : f32 to vector<8x256xf32>
      %341 = arith.maximumf %339, %340 : vector<8x256xf32>
      %342 = arith.subf %327, %337 : vector<8x256xf32>
      %343 = arith.subf %342, %37 : vector<8x256xf32>
      %cst_70 = arith.constant 0.000000e+00 : f32
      %344 = vector.broadcast %cst_70 : f32 to vector<8x256xf32>
      %345 = arith.maximumf %343, %344 : vector<8x256xf32>
      %346 = arith.index_cast %328 : i32 to index
      %347 = memref.load %arg1[%346] : memref<2000xf32, #tpu.memory_space<smem>>
      %cst_71 = arith.constant 1.000000e+00 : f32
      %348 = arith.addf %347, %cst_71 : f32
      %349 = vector.broadcast %348 : f32 to vector<8x256xf32>
      %350 = arith.mulf %349, %341 : vector<8x256xf32>
      %351 = vector.broadcast %347 : f32 to vector<8x256xf32>
      %352 = arith.mulf %351, %310 : vector<8x256xf32>
      %353 = arith.subf %350, %352 : vector<8x256xf32>
      %354 = vector.broadcast %348 : f32 to vector<8x256xf32>
      %355 = arith.mulf %354, %345 : vector<8x256xf32>
      %356 = vector.broadcast %347 : f32 to vector<8x256xf32>
      %357 = arith.mulf %356, %314 : vector<8x256xf32>
      %358 = arith.subf %355, %357 : vector<8x256xf32>
      %c10_i32 = arith.constant 10 : i32
      %359 = arith.addi %48, %c10_i32 : i32
      %360 = arith.subf %353, %358 : vector<8x256xf32>
      %361 = arith.mulf %30, %360 : vector<8x256xf32>
      %c1_i32_72 = arith.constant 1 : i32
      %362 = tpu.dynamic_rotate %361 by %c1_i32_72 dim 0 : vector<8x256xf32>, i32 -> vector<8x256xf32>
      %363 = arith.subf %361, %362 : vector<8x256xf32>
      %364 = arith.addf %10, %363 : vector<8x256xf32>
      %365 = arith.mulf %13, %364 : vector<8x256xf32>
      %c7_i32_73 = arith.constant 7 : i32
      %366 = tpu.dynamic_rotate %365 by %c7_i32_73 dim 0 : vector<8x256xf32>, i32 -> vector<8x256xf32>
      %367 = arith.subf %365, %366 : vector<8x256xf32>
      %368 = arith.mulf %33, %367 : vector<8x256xf32>
      %369 = arith.addf %353, %368 : vector<8x256xf32>
      %370 = arith.subf %369, %37 : vector<8x256xf32>
      %cst_74 = arith.constant 0.000000e+00 : f32
      %371 = vector.broadcast %cst_74 : f32 to vector<8x256xf32>
      %372 = arith.maximumf %370, %371 : vector<8x256xf32>
      %373 = arith.subf %358, %368 : vector<8x256xf32>
      %374 = arith.subf %373, %37 : vector<8x256xf32>
      %cst_75 = arith.constant 0.000000e+00 : f32
      %375 = vector.broadcast %cst_75 : f32 to vector<8x256xf32>
      %376 = arith.maximumf %374, %375 : vector<8x256xf32>
      %377 = arith.index_cast %359 : i32 to index
      %378 = memref.load %arg1[%377] : memref<2000xf32, #tpu.memory_space<smem>>
      %cst_76 = arith.constant 1.000000e+00 : f32
      %379 = arith.addf %378, %cst_76 : f32
      %380 = vector.broadcast %379 : f32 to vector<8x256xf32>
      %381 = arith.mulf %380, %372 : vector<8x256xf32>
      %382 = vector.broadcast %378 : f32 to vector<8x256xf32>
      %383 = arith.mulf %382, %341 : vector<8x256xf32>
      %384 = arith.subf %381, %383 : vector<8x256xf32>
      %385 = vector.broadcast %379 : f32 to vector<8x256xf32>
      %386 = arith.mulf %385, %376 : vector<8x256xf32>
      %387 = vector.broadcast %378 : f32 to vector<8x256xf32>
      %388 = arith.mulf %387, %345 : vector<8x256xf32>
      %389 = arith.subf %386, %388 : vector<8x256xf32>
      %c11_i32 = arith.constant 11 : i32
      %390 = arith.addi %48, %c11_i32 : i32
      %391 = arith.subf %384, %389 : vector<8x256xf32>
      %392 = arith.mulf %30, %391 : vector<8x256xf32>
      %c1_i32_77 = arith.constant 1 : i32
      %393 = tpu.dynamic_rotate %392 by %c1_i32_77 dim 0 : vector<8x256xf32>, i32 -> vector<8x256xf32>
      %394 = arith.subf %392, %393 : vector<8x256xf32>
      %395 = arith.addf %10, %394 : vector<8x256xf32>
      %396 = arith.mulf %13, %395 : vector<8x256xf32>
      %c7_i32_78 = arith.constant 7 : i32
      %397 = tpu.dynamic_rotate %396 by %c7_i32_78 dim 0 : vector<8x256xf32>, i32 -> vector<8x256xf32>
      %398 = arith.subf %396, %397 : vector<8x256xf32>
      %399 = arith.mulf %33, %398 : vector<8x256xf32>
      %400 = arith.addf %384, %399 : vector<8x256xf32>
      %401 = arith.subf %400, %37 : vector<8x256xf32>
      %cst_79 = arith.constant 0.000000e+00 : f32
      %402 = vector.broadcast %cst_79 : f32 to vector<8x256xf32>
      %403 = arith.maximumf %401, %402 : vector<8x256xf32>
      %404 = arith.subf %389, %399 : vector<8x256xf32>
      %405 = arith.subf %404, %37 : vector<8x256xf32>
      %cst_80 = arith.constant 0.000000e+00 : f32
      %406 = vector.broadcast %cst_80 : f32 to vector<8x256xf32>
      %407 = arith.maximumf %405, %406 : vector<8x256xf32>
      %408 = arith.index_cast %390 : i32 to index
      %409 = memref.load %arg1[%408] : memref<2000xf32, #tpu.memory_space<smem>>
      %cst_81 = arith.constant 1.000000e+00 : f32
      %410 = arith.addf %409, %cst_81 : f32
      %411 = vector.broadcast %410 : f32 to vector<8x256xf32>
      %412 = arith.mulf %411, %403 : vector<8x256xf32>
      %413 = vector.broadcast %409 : f32 to vector<8x256xf32>
      %414 = arith.mulf %413, %372 : vector<8x256xf32>
      %415 = arith.subf %412, %414 : vector<8x256xf32>
      %416 = vector.broadcast %410 : f32 to vector<8x256xf32>
      %417 = arith.mulf %416, %407 : vector<8x256xf32>
      %418 = vector.broadcast %409 : f32 to vector<8x256xf32>
      %419 = arith.mulf %418, %376 : vector<8x256xf32>
      %420 = arith.subf %417, %419 : vector<8x256xf32>
      %c12_i32 = arith.constant 12 : i32
      %421 = arith.addi %48, %c12_i32 : i32
      %422 = arith.subf %415, %420 : vector<8x256xf32>
      %423 = arith.mulf %30, %422 : vector<8x256xf32>
      %c1_i32_82 = arith.constant 1 : i32
      %424 = tpu.dynamic_rotate %423 by %c1_i32_82 dim 0 : vector<8x256xf32>, i32 -> vector<8x256xf32>
      %425 = arith.subf %423, %424 : vector<8x256xf32>
      %426 = arith.addf %10, %425 : vector<8x256xf32>
      %427 = arith.mulf %13, %426 : vector<8x256xf32>
      %c7_i32_83 = arith.constant 7 : i32
      %428 = tpu.dynamic_rotate %427 by %c7_i32_83 dim 0 : vector<8x256xf32>, i32 -> vector<8x256xf32>
      %429 = arith.subf %427, %428 : vector<8x256xf32>
      %430 = arith.mulf %33, %429 : vector<8x256xf32>
      %431 = arith.addf %415, %430 : vector<8x256xf32>
      %432 = arith.subf %431, %37 : vector<8x256xf32>
      %cst_84 = arith.constant 0.000000e+00 : f32
      %433 = vector.broadcast %cst_84 : f32 to vector<8x256xf32>
      %434 = arith.maximumf %432, %433 : vector<8x256xf32>
      %435 = arith.subf %420, %430 : vector<8x256xf32>
      %436 = arith.subf %435, %37 : vector<8x256xf32>
      %cst_85 = arith.constant 0.000000e+00 : f32
      %437 = vector.broadcast %cst_85 : f32 to vector<8x256xf32>
      %438 = arith.maximumf %436, %437 : vector<8x256xf32>
      %439 = arith.index_cast %421 : i32 to index
      %440 = memref.load %arg1[%439] : memref<2000xf32, #tpu.memory_space<smem>>
      %cst_86 = arith.constant 1.000000e+00 : f32
      %441 = arith.addf %440, %cst_86 : f32
      %442 = vector.broadcast %441 : f32 to vector<8x256xf32>
      %443 = arith.mulf %442, %434 : vector<8x256xf32>
      %444 = vector.broadcast %440 : f32 to vector<8x256xf32>
      %445 = arith.mulf %444, %403 : vector<8x256xf32>
      %446 = arith.subf %443, %445 : vector<8x256xf32>
      %447 = vector.broadcast %441 : f32 to vector<8x256xf32>
      %448 = arith.mulf %447, %438 : vector<8x256xf32>
      %449 = vector.broadcast %440 : f32 to vector<8x256xf32>
      %450 = arith.mulf %449, %407 : vector<8x256xf32>
      %451 = arith.subf %448, %450 : vector<8x256xf32>
      %c13_i32 = arith.constant 13 : i32
      %452 = arith.addi %48, %c13_i32 : i32
      %453 = arith.subf %446, %451 : vector<8x256xf32>
      %454 = arith.mulf %30, %453 : vector<8x256xf32>
      %c1_i32_87 = arith.constant 1 : i32
      %455 = tpu.dynamic_rotate %454 by %c1_i32_87 dim 0 : vector<8x256xf32>, i32 -> vector<8x256xf32>
      %456 = arith.subf %454, %455 : vector<8x256xf32>
      %457 = arith.addf %10, %456 : vector<8x256xf32>
      %458 = arith.mulf %13, %457 : vector<8x256xf32>
      %c7_i32_88 = arith.constant 7 : i32
      %459 = tpu.dynamic_rotate %458 by %c7_i32_88 dim 0 : vector<8x256xf32>, i32 -> vector<8x256xf32>
      %460 = arith.subf %458, %459 : vector<8x256xf32>
      %461 = arith.mulf %33, %460 : vector<8x256xf32>
      %462 = arith.addf %446, %461 : vector<8x256xf32>
      %463 = arith.subf %462, %37 : vector<8x256xf32>
      %cst_89 = arith.constant 0.000000e+00 : f32
      %464 = vector.broadcast %cst_89 : f32 to vector<8x256xf32>
      %465 = arith.maximumf %463, %464 : vector<8x256xf32>
      %466 = arith.subf %451, %461 : vector<8x256xf32>
      %467 = arith.subf %466, %37 : vector<8x256xf32>
      %cst_90 = arith.constant 0.000000e+00 : f32
      %468 = vector.broadcast %cst_90 : f32 to vector<8x256xf32>
      %469 = arith.maximumf %467, %468 : vector<8x256xf32>
      %470 = arith.index_cast %452 : i32 to index
      %471 = memref.load %arg1[%470] : memref<2000xf32, #tpu.memory_space<smem>>
      %cst_91 = arith.constant 1.000000e+00 : f32
      %472 = arith.addf %471, %cst_91 : f32
      %473 = vector.broadcast %472 : f32 to vector<8x256xf32>
      %474 = arith.mulf %473, %465 : vector<8x256xf32>
      %475 = vector.broadcast %471 : f32 to vector<8x256xf32>
      %476 = arith.mulf %475, %434 : vector<8x256xf32>
      %477 = arith.subf %474, %476 : vector<8x256xf32>
      %478 = vector.broadcast %472 : f32 to vector<8x256xf32>
      %479 = arith.mulf %478, %469 : vector<8x256xf32>
      %480 = vector.broadcast %471 : f32 to vector<8x256xf32>
      %481 = arith.mulf %480, %438 : vector<8x256xf32>
      %482 = arith.subf %479, %481 : vector<8x256xf32>
      %c14_i32 = arith.constant 14 : i32
      %483 = arith.addi %48, %c14_i32 : i32
      %484 = arith.subf %477, %482 : vector<8x256xf32>
      %485 = arith.mulf %30, %484 : vector<8x256xf32>
      %c1_i32_92 = arith.constant 1 : i32
      %486 = tpu.dynamic_rotate %485 by %c1_i32_92 dim 0 : vector<8x256xf32>, i32 -> vector<8x256xf32>
      %487 = arith.subf %485, %486 : vector<8x256xf32>
      %488 = arith.addf %10, %487 : vector<8x256xf32>
      %489 = arith.mulf %13, %488 : vector<8x256xf32>
      %c7_i32_93 = arith.constant 7 : i32
      %490 = tpu.dynamic_rotate %489 by %c7_i32_93 dim 0 : vector<8x256xf32>, i32 -> vector<8x256xf32>
      %491 = arith.subf %489, %490 : vector<8x256xf32>
      %492 = arith.mulf %33, %491 : vector<8x256xf32>
      %493 = arith.addf %477, %492 : vector<8x256xf32>
      %494 = arith.subf %493, %37 : vector<8x256xf32>
      %cst_94 = arith.constant 0.000000e+00 : f32
      %495 = vector.broadcast %cst_94 : f32 to vector<8x256xf32>
      %496 = arith.maximumf %494, %495 : vector<8x256xf32>
      %497 = arith.subf %482, %492 : vector<8x256xf32>
      %498 = arith.subf %497, %37 : vector<8x256xf32>
      %cst_95 = arith.constant 0.000000e+00 : f32
      %499 = vector.broadcast %cst_95 : f32 to vector<8x256xf32>
      %500 = arith.maximumf %498, %499 : vector<8x256xf32>
      %501 = arith.index_cast %483 : i32 to index
      %502 = memref.load %arg1[%501] : memref<2000xf32, #tpu.memory_space<smem>>
      %cst_96 = arith.constant 1.000000e+00 : f32
      %503 = arith.addf %502, %cst_96 : f32
      %504 = vector.broadcast %503 : f32 to vector<8x256xf32>
      %505 = arith.mulf %504, %496 : vector<8x256xf32>
      %506 = vector.broadcast %502 : f32 to vector<8x256xf32>
      %507 = arith.mulf %506, %465 : vector<8x256xf32>
      %508 = arith.subf %505, %507 : vector<8x256xf32>
      %509 = vector.broadcast %503 : f32 to vector<8x256xf32>
      %510 = arith.mulf %509, %500 : vector<8x256xf32>
      %511 = vector.broadcast %502 : f32 to vector<8x256xf32>
      %512 = arith.mulf %511, %469 : vector<8x256xf32>
      %513 = arith.subf %510, %512 : vector<8x256xf32>
      %c15_i32 = arith.constant 15 : i32
      %514 = arith.addi %48, %c15_i32 : i32
      %515 = arith.subf %508, %513 : vector<8x256xf32>
      %516 = arith.mulf %30, %515 : vector<8x256xf32>
      %c1_i32_97 = arith.constant 1 : i32
      %517 = tpu.dynamic_rotate %516 by %c1_i32_97 dim 0 : vector<8x256xf32>, i32 -> vector<8x256xf32>
      %518 = arith.subf %516, %517 : vector<8x256xf32>
      %519 = arith.addf %10, %518 : vector<8x256xf32>
      %520 = arith.mulf %13, %519 : vector<8x256xf32>
      %c7_i32_98 = arith.constant 7 : i32
      %521 = tpu.dynamic_rotate %520 by %c7_i32_98 dim 0 : vector<8x256xf32>, i32 -> vector<8x256xf32>
      %522 = arith.subf %520, %521 : vector<8x256xf32>
      %523 = arith.mulf %33, %522 : vector<8x256xf32>
      %524 = arith.addf %508, %523 : vector<8x256xf32>
      %525 = arith.subf %524, %37 : vector<8x256xf32>
      %cst_99 = arith.constant 0.000000e+00 : f32
      %526 = vector.broadcast %cst_99 : f32 to vector<8x256xf32>
      %527 = arith.maximumf %525, %526 : vector<8x256xf32>
      %528 = arith.subf %513, %523 : vector<8x256xf32>
      %529 = arith.subf %528, %37 : vector<8x256xf32>
      %cst_100 = arith.constant 0.000000e+00 : f32
      %530 = vector.broadcast %cst_100 : f32 to vector<8x256xf32>
      %531 = arith.maximumf %529, %530 : vector<8x256xf32>
      %532 = arith.index_cast %514 : i32 to index
      %533 = memref.load %arg1[%532] : memref<2000xf32, #tpu.memory_space<smem>>
      %cst_101 = arith.constant 1.000000e+00 : f32
      %534 = arith.addf %533, %cst_101 : f32
      %535 = vector.broadcast %534 : f32 to vector<8x256xf32>
      %536 = arith.mulf %535, %527 : vector<8x256xf32>
      %537 = vector.broadcast %533 : f32 to vector<8x256xf32>
      %538 = arith.mulf %537, %496 : vector<8x256xf32>
      %539 = arith.subf %536, %538 : vector<8x256xf32>
      %540 = vector.broadcast %534 : f32 to vector<8x256xf32>
      %541 = arith.mulf %540, %531 : vector<8x256xf32>
      %542 = vector.broadcast %533 : f32 to vector<8x256xf32>
      %543 = arith.mulf %542, %500 : vector<8x256xf32>
      %544 = arith.subf %541, %543 : vector<8x256xf32>
      scf.yield %527, %531, %539, %544 : vector<8x256xf32>, vector<8x256xf32>, vector<8x256xf32>, vector<8x256xf32>
    }
    %c125_i32_14 = arith.constant 125 : i32
    %41 = arith.subf %40#0, %40#1 : vector<8x256xf32>
    %42 = arith.mulf %30, %41 : vector<8x256xf32>
    %c1_i32_15 = arith.constant 1 : i32
    %43 = tpu.dynamic_rotate %42 by %c1_i32_15 dim 0 : vector<8x256xf32>, i32 -> vector<8x256xf32>
    %44 = arith.subf %42, %43 : vector<8x256xf32>
    %45 = arith.addf %10, %44 : vector<8x256xf32>
    %46 = arith.mulf %13, %45 : vector<8x256xf32>
    %c0_16 = arith.constant 0 : index
    %c0_17 = arith.constant 0 : index
    %47 = vector.load %arg6[%c0_16, %c0_17] : memref<8x256xf32, #tpu.memory_space<vmem>>, vector<8x256xf32>
    tpu.vector_store %arg6[%c0_16, %c0_17], %46 {strides = array<i32>} : memref<8x256xf32, #tpu.memory_space<vmem>>, vector<8x256xf32>,
    return
  }
  func.func @transform_0(%arg0: i32) -> i32 {
    %c0_i32 = arith.constant 0 : i32
    %c0_i32_0 = arith.constant 0 : i32
    return %c0_i32 : i32
  }
  func.func @transform_1(%arg0: i32) -> (i32, i32) {
    %c0_i32 = arith.constant 0 : i32
    %c0_i32_0 = arith.constant 0 : i32
    return %c0_i32, %arg0 : i32, i32
  }
  func.func @transform_2(%arg0: i32) -> (i32, i32) {
    %c0_i32 = arith.constant 0 : i32
    %c0_i32_0 = arith.constant 0 : i32
    return %c0_i32, %arg0 : i32, i32
  }
  func.func @transform_3(%arg0: i32) -> (i32, i32) {
    %c0_i32 = arith.constant 0 : i32
    %c0_i32_0 = arith.constant 0 : i32
    return %c0_i32, %arg0 : i32, i32
  }
  func.func @transform_4(%arg0: i32) -> (i32, i32) {
    %c0_i32 = arith.constant 0 : i32
    %c0_i32_0 = arith.constant 0 : i32
    return %c0_i32, %arg0 : i32, i32
  }
  func.func @transform_5(%arg0: i32) -> (i32, i32) {
    %c0_i32 = arith.constant 0 : i32
    %c0_i32_0 = arith.constant 0 : i32
    return %c0_i32, %arg0 : i32, i32
  }
}

</mosaic_0001>

<bundles_post_ra>
// kernel: tpu_custom_call.1
= control target key start
LH: loop header
LB: loop body
LE: loop exit
PB: predicated region body
PF: predicated region fallthrough
CT: control target
= control target key end

     0   :  { %10 = vsyncpa [#allocation5], 0  ;;  %s1642_s0 = inlined_call_operand.hbm [shape: f32[2000], index: 0, kind: input, shape index: {}]   ;;  %s1643_s1 = inlined_call_operand.hbm [shape: f32[8,256], index: 1, kind: input, shape index: {}]   ;;  %s1644_s2 = inlined_call_operand.hbm [shape: f32[8,256], index: 2, kind: input, shape index: {}]   ;;  %s1645_s3 = inlined_call_operand.hbm [shape: f32[8,256], index: 3, kind: input, shape index: {}]   ;;  %s1646_s4 = inlined_call_operand.hbm [shape: f32[8,256], index: 4, kind: input, shape index: {}]   ;;  %s1647_s5 = inlined_call_operand.hbm [shape: f32[8,256], index: 5, kind: output, shape index: {}]  }
   0x1   :  { %11 = vsyncpa [#allocation3], 0 }
   0x2   :  { %12 = vsyncpa [#allocation8], 0 }
   0x3   :  { %13 = vsyncpa [#allocation11], 0  ;;  %s40_s20 = sshll.u32 %s1644_s2, 4  ;;  %s41_s20 = int_to_ptr.hbm [resolvable:$true] %s40_s20 }
   0x4   :  { %14 = vsyncpa [#allocation4], 0  ;;  %s1293_s21 = smov [#allocation7]   ;;  %s20_s25 = sshll.u32 %s1642_s0, 4  ;;  %s21_s25 = int_to_ptr.hbm [resolvable:$true] %s20_s25 }
   0x5   :  { %s42_s22 = sshll.u32 %s1293_s21, 4  ;;  %s1294_s26 = smov [#allocation2]   ;;  %s43_s22 = int_to_ptr.vmem [resolvable:$true] %s42_s22 }
   0x6   :  { %45 = dma.hbm_to_vmem [thread:$0]  %s41_s20, 256, %s43_s22, [#allocation8]  }
   0x7   :  { %23 = dma.hbm_to_smem %s21_s25, 256, %s1294_s26, [#allocation5]  }
   0x8   :  { %s29_s29 = sshll.u32 %s1643_s1, 4  ;;  %s1295_s30 = smov [#allocation6]   ;;  %s30_s29 = int_to_ptr.hbm [resolvable:$true] %s29_s29 }
   0x9   :  { %s31_s2 = sshll.u32 %s1295_s30, 4  ;;  %s51_s8 = sshll.u32 %s1645_s3, 4  ;;  %s32_s2 = int_to_ptr.vmem [resolvable:$true] %s31_s2  ;;  %s52_s8 = int_to_ptr.hbm [resolvable:$true] %s51_s8 }
   0xa   :  { %34 = dma.hbm_to_vmem [thread:$0]  %s30_s29, 256, %s32_s2, [#allocation3]  }
   0xb   :  { %s1296_s9 = smov [#allocation9]   ;;  %s62_s12 = sshll.u32 %s1646_s4, 4  ;;  %s63_s12 = int_to_ptr.hbm [resolvable:$true] %s62_s12 }
   0xc   :  { %s53_s0 = sshll.u32 %s1296_s9, 4  ;;  %s1297_s1 = smov [#allocation10]   ;;  %s54_s0 = int_to_ptr.vmem [resolvable:$true] %s53_s0 }
   0xd   :  { %56 = dma.hbm_to_vmem [thread:$0]  %s52_s8, 256, %s54_s0, [#allocation8]  }
   0xe   :  { %s64_s13 = sshll.u32 %s1297_s1, 4  ;;  %s65_s13 = int_to_ptr.vmem [resolvable:$true] %s64_s13 }
   0xf   :  { %67 = dma.hbm_to_vmem [thread:$0]  %s63_s12, 256, %s65_s13, [#allocation11]  }
  0x10   :  { %1247 = dma.done.wait [#allocation5], 256  }
  0x11   :  { %1248 = vsyncadd [#allocation5], 4294967040 }
  0x12   :  { %1249 = dma.done.wait [#allocation3], 256  }
  0x13   :  { %1250 = vsyncadd [#allocation3], 4294967040 }
  0x14   :  { %1251 = dma.done.wait [#allocation8], 512  }
  0x15   :  { %1252 = vsyncadd [#allocation8], 4294966784 }
  0x16   :  { %1253 = dma.done.wait [#allocation11], 256  }
  0x17   :  { %1254 = vsyncadd [#allocation11], 4294967040 }
  0x18   :  { %88 = sfence }
  0x19   :  { %v89_v0 = vld [vmem:[#allocation6] sm:$0xff]  ;;  %v90_v1 = vld [vmem:[#allocation6 + $0x8] sm:$0xff]  ;;  %v95_v4 = vld [vmem:[#allocation10] sm:$0xff]  ;;  %v137_v12 = vlaneseq  ;;  %v1298_v48 = vmov 0.0   ;;  %v1374_v63 = vmov 0.0   ;;  %s1390_s3 = smov 0  }
  0x1a   :  { %v93_v2 = vld [vmem:[#allocation9] sm:$0xff]  ;;  %v94_v3 = vld [vmem:[#allocation9 + $0x8] sm:$0xff]  ;;  %v96_v5 = vld [vmem:[#allocation10 + $0x8] sm:$0xff]  ;;  %v97_v6 = vadd.f32 1.0, %v95_v4  ;;  %v101_v8 = vmul.f32 %v95_v4, %v89_v0  ;;  %v1376_v0 = vmov 0.0   ;;  %v1384_v4 = vmov 0.0  }
  0x1b   :  { %v98_v7 = vadd.f32 1.0, %v96_v5  ;;  %v102_v9 = vmul.f32 %v96_v5, %v90_v1  ;;  %v91_v10 = vld [vmem:[#allocation7] sm:$0xff]  ;;  %v92_v11 = vld [vmem:[#allocation7 + $0x8] sm:$0xff]  ;;  %v138_v19 = vshrl.u32 %v137_v12, 7  ;;  %v1378_v1 = vmov 0.0  }
  0x1c   :  { %v99_v13 = vmax.f32 %v97_v6, 1e-06  ;;  %v103_v15 = vsub.f32 %v93_v2, %v101_v8  ;;  %v1380_v2 = vmov 0.0   ;;  %v1386_v5 = vmov 0.0  }
  0x1d   :  { %v100_v14 = vmax.f32 %v98_v7, 1e-06  ;;  %v104_v16 = vsub.f32 %v94_v3, %v102_v9  ;;  %vm139_vm0 = vcmp.lt.s32.totalorder %v138_v19, 7  ;;  %v1382_v3 = vmov 0.0  }
  0x1e   :  { %v1345_v17 = vsub.f32 %v103_v15, %v91_v10  ;;  %1075 = vrcp.f32 %v99_v13  ;;  %v147_v20 = vrot.slane %v99_v13, 4  ;;  %vm112_vm1 = vweird.f32 %v99_v13 }
  0x1f   :  { %v1347_v18 = vsub.f32 %v104_v16, %v92_v11  ;;  %1077 = vrcp.f32 %v100_v14  ;;  %v153_v21 = vrot.slane %v100_v14, 4  ;;  %v116_v29 = vand.u32 2147483647, %v99_v13 }
  0x20   :  { %v148_v22 = vmin.f32 %v99_v13, %v147_v20  ;;  %v118_v30 = vand.u32 2147483648, %v99_v13  ;;  %vm126_vm2 = vweird.f32 %v100_v14  ;;  %v130_v35 = vand.u32 2147483647, %v100_v14 }
  0x21   :  { %v154_v23 = vmin.f32 %v100_v14, %v153_v21  ;;  %v132_v36 = vand.u32 2147483648, %v100_v14  ;;  %vm117_vm6 = vcmp.eq.f32.partialorder %v116_v29, 8.507059e+37  ;;  %v1356_v49 = vsel %vm139_vm0, 1.0, %v1298_v48 }
  0x22   :  { %v149_v25 = vrot.slane %v148_v22, 2  ;;  %v119_v42 = vor.u32 1.1754944e-38, %v118_v30  ;;  %vm131_vm8 = vcmp.eq.f32.partialorder %v130_v35, 8.507059e+37  ;;  %v1388_v6 = vmov 0.0  }
  0x23   :  { %v155_v26 = vrot.slane %v154_v23, 2  ;;  %v133_v47 = vor.u32 1.1754944e-38, %v132_v36 }
  0x24   :  { %v1076_v24 = vpop.eup %1075  ;;  %v150_v32 = vmin.f32 %v148_v22, %v149_v25 }
  0x25   :  { %v1078_v27 = vpop.eup %1077  ;;  %v108_v28 = vmul.f32 %v1076_v24, %v99_v13  ;;  %v156_v33 = vmin.f32 %v154_v23, %v155_v26  ;;  %vm113_vm3 = vweird.f32 %v1076_v24 }
  0x26   :  { %v122_v31 = vmul.f32 %v1078_v27, %v100_v14  ;;  %vm127_vm4 = vweird.f32 %v1078_v27  ;;  %v151_v38 = vrot.slane %v150_v32, 1  ;;  %vm1350_vm5 = vmor %vm112_vm1, %vm113_vm3 }
  0x27   :  { %v109_v34 = vsub.f32 1.0, %v108_v28  ;;  %v157_v39 = vrot.slane %v156_v33, 1  ;;  %vm128_vm7 = vmor %vm126_vm2, %vm127_vm4 }
  0x28   :  { %v123_v37 = vsub.f32 1.0, %v122_v31  ;;  %v152_v44 = vmin.f32 %v150_v32, %v151_v38 }
  0x29   :  { %v110_v40 = vmul.f32 %v1076_v24, %v109_v34  ;;  %v158_v45 = vmin.f32 %v156_v33, %v157_v39 }
  0x2a   :  { %v124_v43 = vmul.f32 %v1078_v27, %v123_v37  ;;  %v159_v51 = vmul.f32 0.125, %v152_v44 }
  0x2b   :  { %v111_v46 = vadd.f32 %v1076_v24, %v110_v40  ;;  %v160_v52 = vmul.f32 0.125, %v158_v45 }
  0x2c   :  { %v125_v50 = vadd.f32 %v1078_v27, %v124_v43  ;;  %v1361_v56 = vmul.f32 %v1356_v49, %v159_v51  ;;  %v1368_v60 = vmul.f32 0.2, %v159_v51 }
  0x2d   :  { %v115_v53 = vsel %vm1350_vm5, %v1076_v24, %v111_v46  ;;  %v1364_v57 = vmul.f32 %v1356_v49, %v160_v52  ;;  %v1370_v61 = vmul.f32 0.2, %v160_v52 }
  0x2e   :  { %v120_v54 = vsel %vm117_vm6, %v119_v42, %v115_v53  ;;  %v129_v55 = vsel %vm128_vm7, %v1078_v27, %v125_v50 }
  0x2f   :  { %v134_v58 = vsel %vm131_vm8, %v133_v47, %v129_v55  ;;  %v1366_v59 = vsub.f32 0.0, %v120_v54 }
  0x30   :  { %v1372_v62 = vsub.f32 0.0, %v134_v58 }
  0x31 LB: > { %v180_v7 = vsub.f32 %v1271_v2, %v1263_v0  ;;  %v181_v8 = vsub.f32 %v1267_v1, %v1259_v63  ;;  %s1406_s4 = sshll.u32 %s1291_s3, 4  ;;  %s170_s3 = sadd.s32 1, %s1291_s3   ;;  %s1291_s3 = sphi %s1390_s3, %s170_s3   ;;  %v1287_v6 = vphi %v1388_v6, %v1653_v6   ;;  %v1283_v5 = vphi %v1386_v5, %v1652_v5   ;;  %v1279_v4 = vphi %v1384_v4, %v1651_v4   ;;  %v1275_v3 = vphi %v1382_v3, %v1650_v3   ;;  %v1271_v2 = vphi %v1380_v2, %v923_v2   ;;  %v1267_v1 = vphi %v1378_v1, %v924_v1   ;;  %v1263_v0 = vphi %v1376_v0, %v929_v0   ;;  %v1259_v63 = vphi %v1374_v63, %v930_v63  }
  0x32   : > { %s210_s14 = sld [smem:[#allocation2 + %s1406_s4]]  ;;  %s226_s16 = sadd.s32 1, %s1406_s4 }
  0x33   : > { %v182_v9 = vmul.f32 %v1356_v49, %v180_v7  ;;  %v183_v10 = vmul.f32 %v1356_v49, %v181_v8  ;;  %s257_s17 = sld [smem:[#allocation2 + %s226_s16]]  ;;  %s273_s19 = sadd.s32 2, %s1406_s4 }
  0x34   : > { %s304_s20 = sld [smem:[#allocation2 + %s273_s19]]  ;;  %s320_s22 = sadd.s32 3, %s1406_s4 }
  0x35   : > { %v184_v11 = vrot.slane %v182_v9, 7  ;;  %v185_v12 = vrot.slane %v183_v10, 7  ;;  %s351_s23 = sld [smem:[#allocation2 + %s320_s22]]  ;;  %s367_s25 = sadd.s32 4, %s1406_s4 }
  0x36   : > { %s398_s26 = sld [smem:[#allocation2 + %s367_s25]]  ;;  %s414_s28 = sadd.s32 5, %s1406_s4 }
  0x37   : > { %v186_v13 = vsub.f32 %v182_v9, %v184_v11  ;;  %v187_v14 = vsub.f32 %v183_v10, %v185_v12  ;;  %s445_s29 = sld [smem:[#allocation2 + %s414_s28]]  ;;  %s461_s2 = sadd.s32 6, %s1406_s4 }
  0x38   : > { %v215_v27 = vstv %s210_s14  ;;  %s211_s15 = sadd.f32 1.0, %s210_s14  ;;  %s508_s8 = sadd.s32 7, %s1406_s4 }
  0x39   : > { %v188_v15 = vadd.f32 %v186_v13, %v1345_v17  ;;  %v189_v16 = vadd.f32 %v187_v14, %v1347_v18  ;;  %v216_v32 = vmul.f32 %v1287_v6, %v215_v27  ;;  %v217_v38 = vmul.f32 %v1283_v5, %v215_v27  ;;  %s258_s18 = sadd.f32 1.0, %s257_s17  ;;  %s555_s10 = sadd.s32 8, %s1406_s4 }
  0x3a   : > { %v212_v37 = vstv %s211_s15  ;;  %v222_v39 = vmul.f32 %v1279_v4, %v215_v27  ;;  %v223_v40 = vmul.f32 %v1275_v3, %v215_v27  ;;  %v262_v14 = vstv %s257_s17  ;;  %s305_s21 = sadd.f32 1.0, %s304_s20  ;;  %s602_s1 = sadd.s32 9, %s1406_s4 }
  0x3b   : > { %v190_v19 = vmul.f32 %v188_v15, %v1366_v59  ;;  %v191_v20 = vmul.f32 %v189_v16, %v1372_v62  ;;  %s352_s24 = sadd.f32 1.0, %s351_s23  ;;  %s649_s15 = sadd.s32 10, %s1406_s4 }
  0x3c   : > { %s399_s27 = sadd.f32 1.0, %s398_s26  ;;  %p167_p0 = scmp.ge.s32.totalorder %s170_s3, 125  }
  0x3d   : > { %v192_v21 = vrot.slane %v190_v19, 1  ;;  %v193_v22 = vrot.slane %v191_v20, 1  ;;  %s446_s30 = sadd.f32 1.0, %s445_s29  ;;  %s952_s3 = sshll.u32 (%p167_p0), %s1647_s5, 4  ;;  %s953_s3 = int_to_ptr.hbm [resolvable:$true] %s952_s3 }
  0x3e   : > { %s492_s6 = sld [smem:[#allocation2 + %s461_s2]] }
  0x3f   : > { %v194_v23 = vsub.f32 %v190_v19, %v192_v21  ;;  %v195_v24 = vsub.f32 %v191_v20, %v193_v22  ;;  %v259_v21 = vstv %s258_s18  ;;  %s539_s9 = sld [smem:[#allocation2 + %s508_s8]]  ;;  %s696_s18 = sadd.s32 11, %s1406_s4 }
  0x40   : > { %s586_s11 = sld [smem:[#allocation2 + %s555_s10]] }
  0x41   : > { %v196_v25 = vmul.f32 %v194_v23, %v1361_v56  ;;  %v197_v26 = vmul.f32 %v195_v24, %v1364_v57  ;;  %s633_s13 = sld [smem:[#allocation2 + %s602_s1]] }
  0x42   : > { %s680_s16 = sld [smem:[#allocation2 + %s649_s15]] }
  0x43   : > { %v198_v28 = vadd.f32 %v1271_v2, %v196_v25  ;;  %v199_v29 = vadd.f32 %v1267_v1, %v197_v26  ;;  %v204_v30 = vsub.f32 %v1263_v0, %v196_v25  ;;  %v205_v31 = vsub.f32 %v1259_v63, %v197_v26  ;;  %s727_s19 = sld [smem:[#allocation2 + %s696_s18]] }
  0x44   : > { %s493_s7 = sadd.f32 1.0, %s492_s6 }
  0x45   : > { %v200_v33 = vsub.f32 %v198_v28, %v1368_v60  ;;  %v201_v34 = vsub.f32 %v199_v29, %v1370_v61  ;;  %v206_v35 = vsub.f32 %v204_v30, %v1368_v60  ;;  %v207_v36 = vsub.f32 %v205_v31, %v1370_v61  ;;  %s540_s0 = sadd.f32 1.0, %s539_s9 }
  0x46   : > { %s587_s12 = sadd.f32 1.0, %s586_s11 }
  0x47   : > { %v202_v41 = vmax.f32 %v200_v33, 0.0  ;;  %v203_v42 = vmax.f32 %v201_v34, 0.0  ;;  %v208_v43 = vmax.f32 %v206_v35, 0.0  ;;  %v209_v44 = vmax.f32 %v207_v36, 0.0  ;;  %s634_s14 = sadd.f32 1.0, %s633_s13 }
  0x48   : > { %s681_s17 = sadd.f32 1.0, %s680_s16 }
  0x49   : > { %v213_v45 = vmul.f32 %v212_v37, %v202_v41  ;;  %v214_v46 = vmul.f32 %v212_v37, %v203_v42  ;;  %v220_v47 = vmul.f32 %v212_v37, %v208_v43  ;;  %v221_v48 = vmul.f32 %v212_v37, %v209_v44 }
  0x4a   : > { %v263_v26 = vmul.f32 %v262_v14, %v202_v41  ;;  %v264_v27 = vmul.f32 %v262_v14, %v203_v42  ;;  %v269_v28 = vmul.f32 %v262_v14, %v208_v43  ;;  %v270_v29 = vmul.f32 %v262_v14, %v209_v44 }
  0x4b   : > { %v218_v50 = vsub.f32 %v213_v45, %v216_v32  ;;  %v219_v51 = vsub.f32 %v214_v46, %v217_v38  ;;  %v224_v52 = vsub.f32 %v220_v47, %v222_v39  ;;  %v225_v53 = vsub.f32 %v221_v48, %v223_v40 }
  0x4d   : > { %v227_v54 = vsub.f32 %v218_v50, %v224_v52  ;;  %v228_v55 = vsub.f32 %v219_v51, %v225_v53 }
  0x4f   : > { %v229_v58 = vmul.f32 %v1356_v49, %v227_v54  ;;  %v230_v63 = vmul.f32 %v1356_v49, %v228_v55 }
  0x51   : > { %v231_v0 = vrot.slane %v229_v58, 7  ;;  %v232_v1 = vrot.slane %v230_v63, 7 }
  0x53   : > { %v233_v2 = vsub.f32 %v229_v58, %v231_v0  ;;  %v234_v3 = vsub.f32 %v230_v63, %v232_v1 }
  0x55   : > { %v235_v4 = vadd.f32 %v233_v2, %v1345_v17  ;;  %v236_v5 = vadd.f32 %v234_v3, %v1347_v18  ;;  %v309_v3 = vstv %s304_s20  ;;  %s728_s20 = sadd.f32 1.0, %s727_s19 }
  0x57   : > { %v237_v6 = vmul.f32 %v235_v4, %v1366_v59  ;;  %v238_v7 = vmul.f32 %v236_v5, %v1372_v62 }
  0x59   : > { %v239_v8 = vrot.slane %v237_v6, 1  ;;  %v240_v9 = vrot.slane %v238_v7, 1 }
  0x5b   : > { %v241_v10 = vsub.f32 %v237_v6, %v239_v8  ;;  %v242_v11 = vsub.f32 %v238_v7, %v240_v9  ;;  %v306_v8 = vstv %s305_s21  ;;  %s743_s21 = sadd.s32 12, %s1406_s4 }
  0x5c   : > { %s774_s22 = sld [smem:[#allocation2 + %s743_s21]] }
  0x5d   : > { %v243_v12 = vmul.f32 %v241_v10, %v1361_v56  ;;  %v244_v13 = vmul.f32 %v242_v11, %v1364_v57 }
  0x5f   : > { %v245_v15 = vadd.f32 %v243_v12, %v218_v50  ;;  %v246_v16 = vadd.f32 %v244_v13, %v219_v51  ;;  %v251_v19 = vsub.f32 %v224_v52, %v243_v12  ;;  %v252_v20 = vsub.f32 %v225_v53, %v244_v13 }
  0x61   : > { %v247_v22 = vsub.f32 %v245_v15, %v1368_v60  ;;  %v248_v23 = vsub.f32 %v246_v16, %v1370_v61  ;;  %v253_v24 = vsub.f32 %v251_v19, %v1368_v60  ;;  %v254_v25 = vsub.f32 %v252_v20, %v1370_v61 }
  0x63   : > { %v249_v30 = vmax.f32 %v247_v22, 0.0  ;;  %v250_v31 = vmax.f32 %v248_v23, 0.0  ;;  %v255_v32 = vmax.f32 %v253_v24, 0.0  ;;  %v256_v33 = vmax.f32 %v254_v25, 0.0 }
  0x65   : > { %v260_v34 = vmul.f32 %v259_v21, %v249_v30  ;;  %v261_v35 = vmul.f32 %v259_v21, %v250_v31  ;;  %v267_v36 = vmul.f32 %v259_v21, %v255_v32  ;;  %v268_v37 = vmul.f32 %v259_v21, %v256_v33 }
  0x66   : > { %v310_v13 = vmul.f32 %v309_v3, %v249_v30  ;;  %v311_v14 = vmul.f32 %v309_v3, %v250_v31  ;;  %v316_v15 = vmul.f32 %v309_v3, %v255_v32  ;;  %v317_v16 = vmul.f32 %v309_v3, %v256_v33 }
  0x67   : > { %v265_v38 = vsub.f32 %v260_v34, %v263_v26  ;;  %v266_v39 = vsub.f32 %v261_v35, %v264_v27  ;;  %v271_v40 = vsub.f32 %v267_v36, %v269_v28  ;;  %v272_v45 = vsub.f32 %v268_v37, %v270_v29 }
  0x69   : > { %v274_v46 = vsub.f32 %v265_v38, %v271_v40  ;;  %v275_v47 = vsub.f32 %v266_v39, %v272_v45 }
  0x6b   : > { %v276_v41 = vmul.f32 %v1356_v49, %v274_v46  ;;  %v277_v42 = vmul.f32 %v1356_v49, %v275_v47 }
  0x6d   : > { %v278_v43 = vrot.slane %v276_v41, 7  ;;  %v279_v44 = vrot.slane %v277_v42, 7 }
  0x6f   : > { %v280_v48 = vsub.f32 %v276_v41, %v278_v43  ;;  %v281_v50 = vsub.f32 %v277_v42, %v279_v44 }
  0x71   : > { %v282_v51 = vadd.f32 %v280_v48, %v1345_v17  ;;  %v283_v52 = vadd.f32 %v281_v50, %v1347_v18  ;;  %v356_v50 = vstv %s351_s23  ;;  %s775_s23 = sadd.f32 1.0, %s774_s22 }
  0x73   : > { %v284_v53 = vmul.f32 %v282_v51, %v1366_v59  ;;  %v285_v54 = vmul.f32 %v283_v52, %v1372_v62 }
  0x75   : > { %v286_v55 = vrot.slane %v284_v53, 1  ;;  %v287_v58 = vrot.slane %v285_v54, 1 }
  0x77   : > { %v288_v63 = vsub.f32 %v284_v53, %v286_v55  ;;  %v289_v0 = vsub.f32 %v285_v54, %v287_v58  ;;  %v353_v55 = vstv %s352_s24  ;;  %s790_s24 = sadd.s32 13, %s1406_s4 }
  0x78   : > { %s821_s25 = sld [smem:[#allocation2 + %s790_s24]] }
  0x79   : > { %v290_v1 = vmul.f32 %v288_v63, %v1361_v56  ;;  %v291_v2 = vmul.f32 %v289_v0, %v1364_v57 }
  0x7b   : > { %v292_v4 = vadd.f32 %v290_v1, %v265_v38  ;;  %v293_v5 = vadd.f32 %v291_v2, %v266_v39  ;;  %v298_v6 = vsub.f32 %v271_v40, %v290_v1  ;;  %v299_v7 = vsub.f32 %v272_v45, %v291_v2 }
  0x7d   : > { %v294_v9 = vsub.f32 %v292_v4, %v1368_v60  ;;  %v295_v10 = vsub.f32 %v293_v5, %v1370_v61  ;;  %v300_v11 = vsub.f32 %v298_v6, %v1368_v60  ;;  %v301_v12 = vsub.f32 %v299_v7, %v1370_v61 }
  0x7f   : > { %v296_v19 = vmax.f32 %v294_v9, 0.0  ;;  %v297_v20 = vmax.f32 %v295_v10, 0.0  ;;  %v302_v21 = vmax.f32 %v300_v11, 0.0  ;;  %v303_v22 = vmax.f32 %v301_v12, 0.0 }
  0x81   : > { %v307_v23 = vmul.f32 %v306_v8, %v296_v19  ;;  %v308_v24 = vmul.f32 %v306_v8, %v297_v20  ;;  %v314_v25 = vmul.f32 %v306_v8, %v302_v21  ;;  %v315_v26 = vmul.f32 %v306_v8, %v303_v22 }
  0x82   : > { %v357_v2 = vmul.f32 %v356_v50, %v296_v19  ;;  %v358_v3 = vmul.f32 %v356_v50, %v297_v20  ;;  %v363_v4 = vmul.f32 %v356_v50, %v302_v21  ;;  %v364_v5 = vmul.f32 %v356_v50, %v303_v22 }
  0x83   : > { %v312_v27 = vsub.f32 %v307_v23, %v310_v13  ;;  %v313_v28 = vsub.f32 %v308_v24, %v311_v14  ;;  %v318_v29 = vsub.f32 %v314_v25, %v316_v15  ;;  %v319_v34 = vsub.f32 %v315_v26, %v317_v16 }
  0x85   : > { %v321_v35 = vsub.f32 %v312_v27, %v318_v29  ;;  %v322_v36 = vsub.f32 %v313_v28, %v319_v34 }
  0x87   : > { %v323_v30 = vmul.f32 %v1356_v49, %v321_v35  ;;  %v324_v31 = vmul.f32 %v1356_v49, %v322_v36 }
  0x89   : > { %v325_v32 = vrot.slane %v323_v30, 7  ;;  %v326_v33 = vrot.slane %v324_v31, 7 }
  0x8b   : > { %v327_v37 = vsub.f32 %v323_v30, %v325_v32  ;;  %v328_v38 = vsub.f32 %v324_v31, %v326_v33 }
  0x8d   : > { %v329_v39 = vadd.f32 %v327_v37, %v1345_v17  ;;  %v330_v40 = vadd.f32 %v328_v38, %v1347_v18  ;;  %v403_v38 = vstv %s398_s26  ;;  %s822_s26 = sadd.f32 1.0, %s821_s25 }
  0x8f   : > { %v331_v45 = vmul.f32 %v329_v39, %v1366_v59  ;;  %v332_v46 = vmul.f32 %v330_v40, %v1372_v62 }
  0x91   : > { %v333_v47 = vrot.slane %v331_v45, 1  ;;  %v334_v41 = vrot.slane %v332_v46, 1 }
  0x93   : > { %v335_v42 = vsub.f32 %v331_v45, %v333_v47  ;;  %v336_v43 = vsub.f32 %v332_v46, %v334_v41  ;;  %v400_v47 = vstv %s399_s27  ;;  %s837_s27 = sadd.s32 14, %s1406_s4 }
  0x94   : > { %s868_s28 = sld [smem:[#allocation2 + %s837_s27]] }
  0x95   : > { %v337_v44 = vmul.f32 %v335_v42, %v1361_v56  ;;  %v338_v48 = vmul.f32 %v336_v43, %v1364_v57 }
  0x97   : > { %v339_v51 = vadd.f32 %v337_v44, %v312_v27  ;;  %v340_v52 = vadd.f32 %v338_v48, %v313_v28  ;;  %v345_v53 = vsub.f32 %v318_v29, %v337_v44  ;;  %v346_v54 = vsub.f32 %v319_v34, %v338_v48 }
  0x99   : > { %v341_v58 = vsub.f32 %v339_v51, %v1368_v60  ;;  %v342_v63 = vsub.f32 %v340_v52, %v1370_v61  ;;  %v347_v0 = vsub.f32 %v345_v53, %v1368_v60  ;;  %v348_v1 = vsub.f32 %v346_v54, %v1370_v61 }
  0x9b   : > { %v343_v6 = vmax.f32 %v341_v58, 0.0  ;;  %v344_v7 = vmax.f32 %v342_v63, 0.0  ;;  %v349_v8 = vmax.f32 %v347_v0, 0.0  ;;  %v350_v9 = vmax.f32 %v348_v1, 0.0 }
  0x9d   : > { %v354_v10 = vmul.f32 %v353_v55, %v343_v6  ;;  %v355_v11 = vmul.f32 %v353_v55, %v344_v7  ;;  %v361_v12 = vmul.f32 %v353_v55, %v349_v8  ;;  %v362_v13 = vmul.f32 %v353_v55, %v350_v9 }
  0x9e   : > { %v404_v48 = vmul.f32 %v403_v38, %v343_v6  ;;  %v405_v50 = vmul.f32 %v403_v38, %v344_v7  ;;  %v410_v51 = vmul.f32 %v403_v38, %v349_v8  ;;  %v411_v52 = vmul.f32 %v403_v38, %v350_v9 }
  0x9f   : > { %v359_v14 = vsub.f32 %v354_v10, %v357_v2  ;;  %v360_v15 = vsub.f32 %v355_v11, %v358_v3  ;;  %v365_v16 = vsub.f32 %v361_v12, %v363_v4  ;;  %v366_v23 = vsub.f32 %v362_v13, %v364_v5 }
  0xa1   : > { %v368_v24 = vsub.f32 %v359_v14, %v365_v16  ;;  %v369_v25 = vsub.f32 %v360_v15, %v366_v23 }
  0xa3   : > { %v370_v19 = vmul.f32 %v1356_v49, %v368_v24  ;;  %v371_v20 = vmul.f32 %v1356_v49, %v369_v25 }
  0xa5   : > { %v372_v21 = vrot.slane %v370_v19, 7  ;;  %v373_v22 = vrot.slane %v371_v20, 7 }
  0xa7   : > { %v374_v26 = vsub.f32 %v370_v19, %v372_v21  ;;  %v375_v27 = vsub.f32 %v371_v20, %v373_v22 }
  0xa9   : > { %v376_v28 = vadd.f32 %v374_v26, %v1345_v17  ;;  %v377_v29 = vadd.f32 %v375_v27, %v1347_v18  ;;  %v450_v27 = vstv %s445_s29  ;;  %s869_s29 = sadd.f32 1.0, %s868_s28 }
  0xab   : > { %v378_v34 = vmul.f32 %v376_v28, %v1366_v59  ;;  %v379_v35 = vmul.f32 %v377_v29, %v1372_v62 }
  0xad   : > { %v380_v36 = vrot.slane %v378_v34, 1  ;;  %v381_v30 = vrot.slane %v379_v35, 1 }
  0xaf   : > { %v382_v31 = vsub.f32 %v378_v34, %v380_v36  ;;  %v383_v32 = vsub.f32 %v379_v35, %v381_v30  ;;  %v447_v36 = vstv %s446_s30  ;;  %s884_s30 = sadd.s32 15, %s1406_s4  ;;  %s1299_s4 = smov (%p167_p0), [#allocation12]  }
  0xb0   : > { %s915_s2 = sld [smem:[#allocation2 + %s884_s30]] }
  0xb1   : > { %v384_v33 = vmul.f32 %v382_v31, %v1361_v56  ;;  %v385_v37 = vmul.f32 %v383_v32, %v1364_v57 }
  0xb3   : > { %v386_v39 = vadd.f32 %v384_v33, %v359_v14  ;;  %v387_v40 = vadd.f32 %v385_v37, %v360_v15  ;;  %v392_v45 = vsub.f32 %v365_v16, %v384_v33  ;;  %v393_v46 = vsub.f32 %v366_v23, %v385_v37 }
  0xb5   : > { %v388_v41 = vsub.f32 %v386_v39, %v1368_v60  ;;  %v389_v42 = vsub.f32 %v387_v40, %v1370_v61  ;;  %v394_v43 = vsub.f32 %v392_v45, %v1368_v60  ;;  %v395_v44 = vsub.f32 %v393_v46, %v1370_v61 }
  0xb7   : > { %v390_v53 = vmax.f32 %v388_v41, 0.0  ;;  %v391_v54 = vmax.f32 %v389_v42, 0.0  ;;  %v396_v55 = vmax.f32 %v394_v43, 0.0  ;;  %v397_v58 = vmax.f32 %v395_v44, 0.0 }
  0xb9   : > { %v401_v63 = vmul.f32 %v400_v47, %v390_v53  ;;  %v402_v0 = vmul.f32 %v400_v47, %v391_v54  ;;  %v408_v1 = vmul.f32 %v400_v47, %v396_v55  ;;  %v409_v2 = vmul.f32 %v400_v47, %v397_v58 }
  0xba   : > { %v451_v37 = vmul.f32 %v450_v27, %v390_v53  ;;  %v452_v38 = vmul.f32 %v450_v27, %v391_v54  ;;  %v457_v39 = vmul.f32 %v450_v27, %v396_v55  ;;  %v458_v40 = vmul.f32 %v450_v27, %v397_v58 }
  0xbb   : > { %v406_v3 = vsub.f32 %v401_v63, %v404_v48  ;;  %v407_v4 = vsub.f32 %v402_v0, %v405_v50  ;;  %v412_v5 = vsub.f32 %v408_v1, %v410_v51  ;;  %v413_v10 = vsub.f32 %v409_v2, %v411_v52 }
  0xbd   : > { %v415_v11 = vsub.f32 %v406_v3, %v412_v5  ;;  %v416_v12 = vsub.f32 %v407_v4, %v413_v10 }
  0xbf   : > { %v417_v6 = vmul.f32 %v1356_v49, %v415_v11  ;;  %v418_v7 = vmul.f32 %v1356_v49, %v416_v12 }
  0xc1   : > { %v419_v8 = vrot.slane %v417_v6, 7  ;;  %v420_v9 = vrot.slane %v418_v7, 7 }
  0xc3   : > { %v421_v13 = vsub.f32 %v417_v6, %v419_v8  ;;  %v422_v14 = vsub.f32 %v418_v7, %v420_v9 }
  0xc5   : > { %v423_v15 = vadd.f32 %v421_v13, %v1345_v17  ;;  %v424_v16 = vadd.f32 %v422_v14, %v1347_v18  ;;  %v497_v14 = vstv %s492_s6  ;;  %s916_s6 = sadd.f32 1.0, %s915_s2 }
  0xc7   : > { %v425_v23 = vmul.f32 %v423_v15, %v1366_v59  ;;  %v426_v24 = vmul.f32 %v424_v16, %v1372_v62 }
  0xc9   : > { %v427_v25 = vrot.slane %v425_v23, 1  ;;  %v428_v19 = vrot.slane %v426_v24, 1 }
  0xcb   : > { %v429_v20 = vsub.f32 %v425_v23, %v427_v25  ;;  %v430_v21 = vsub.f32 %v426_v24, %v428_v19  ;;  %v494_v25 = vstv %s493_s7  ;;  %s950_s7 = sshll.u32 (%p167_p0), %s1299_s4, 4  ;;  %s951_s7 = int_to_ptr.vmem [resolvable:$true] %s950_s7 }
  0xcd   : > { %v431_v22 = vmul.f32 %v429_v20, %v1361_v56  ;;  %v432_v26 = vmul.f32 %v430_v21, %v1364_v57 }
  0xcf   : > { %v433_v28 = vadd.f32 %v431_v22, %v406_v3  ;;  %v434_v29 = vadd.f32 %v432_v26, %v407_v4  ;;  %v439_v34 = vsub.f32 %v412_v5, %v431_v22  ;;  %v440_v35 = vsub.f32 %v413_v10, %v432_v26 }
  0xd1   : > { %v435_v30 = vsub.f32 %v433_v28, %v1368_v60  ;;  %v436_v31 = vsub.f32 %v434_v29, %v1370_v61  ;;  %v441_v32 = vsub.f32 %v439_v34, %v1368_v60  ;;  %v442_v33 = vsub.f32 %v440_v35, %v1370_v61 }
  0xd3   : > { %v437_v45 = vmax.f32 %v435_v30, 0.0  ;;  %v438_v46 = vmax.f32 %v436_v31, 0.0  ;;  %v443_v47 = vmax.f32 %v441_v32, 0.0  ;;  %v444_v41 = vmax.f32 %v442_v33, 0.0 }
  0xd5   : > { %v448_v42 = vmul.f32 %v447_v36, %v437_v45  ;;  %v449_v43 = vmul.f32 %v447_v36, %v438_v46  ;;  %v455_v44 = vmul.f32 %v447_v36, %v443_v47  ;;  %v456_v48 = vmul.f32 %v447_v36, %v444_v41 }
  0xd6   : > { %v498_v26 = vmul.f32 %v497_v14, %v437_v45  ;;  %v499_v27 = vmul.f32 %v497_v14, %v438_v46  ;;  %v504_v28 = vmul.f32 %v497_v14, %v443_v47  ;;  %v505_v29 = vmul.f32 %v497_v14, %v444_v41 }
  0xd7   : > { %v453_v50 = vsub.f32 %v448_v42, %v451_v37  ;;  %v454_v51 = vsub.f32 %v449_v43, %v452_v38  ;;  %v459_v52 = vsub.f32 %v455_v44, %v457_v39  ;;  %v460_v63 = vsub.f32 %v456_v48, %v458_v40 }
  0xd9   : > { %v462_v0 = vsub.f32 %v453_v50, %v459_v52  ;;  %v463_v1 = vsub.f32 %v454_v51, %v460_v63 }
  0xdb   : > { %v464_v53 = vmul.f32 %v1356_v49, %v462_v0  ;;  %v465_v54 = vmul.f32 %v1356_v49, %v463_v1 }
  0xdd   : > { %v466_v55 = vrot.slane %v464_v53, 7  ;;  %v467_v58 = vrot.slane %v465_v54, 7 }
  0xdf   : > { %v468_v2 = vsub.f32 %v464_v53, %v466_v55  ;;  %v469_v3 = vsub.f32 %v465_v54, %v467_v58 }
  0xe1   : > { %v470_v4 = vadd.f32 %v468_v2, %v1345_v17  ;;  %v471_v5 = vadd.f32 %v469_v3, %v1347_v18  ;;  %v544_v3 = vstv %s539_s9 }
  0xe3   : > { %v472_v10 = vmul.f32 %v470_v4, %v1366_v59  ;;  %v473_v11 = vmul.f32 %v471_v5, %v1372_v62 }
  0xe5   : > { %v474_v12 = vrot.slane %v472_v10, 1  ;;  %v475_v6 = vrot.slane %v473_v11, 1 }
  0xe7   : > { %v476_v7 = vsub.f32 %v472_v10, %v474_v12  ;;  %v477_v8 = vsub.f32 %v473_v11, %v475_v6  ;;  %v541_v12 = vstv %s540_s0 }
  0xe9   : > { %v478_v9 = vmul.f32 %v476_v7, %v1361_v56  ;;  %v479_v13 = vmul.f32 %v477_v8, %v1364_v57 }
  0xeb   : > { %v480_v15 = vadd.f32 %v478_v9, %v453_v50  ;;  %v481_v16 = vadd.f32 %v479_v13, %v454_v51  ;;  %v486_v23 = vsub.f32 %v459_v52, %v478_v9  ;;  %v487_v24 = vsub.f32 %v460_v63, %v479_v13 }
  0xed   : > { %v482_v19 = vsub.f32 %v480_v15, %v1368_v60  ;;  %v483_v20 = vsub.f32 %v481_v16, %v1370_v61  ;;  %v488_v21 = vsub.f32 %v486_v23, %v1368_v60  ;;  %v489_v22 = vsub.f32 %v487_v24, %v1370_v61 }
  0xef   : > { %v484_v34 = vmax.f32 %v482_v19, 0.0  ;;  %v485_v35 = vmax.f32 %v483_v20, 0.0  ;;  %v490_v36 = vmax.f32 %v488_v21, 0.0  ;;  %v491_v30 = vmax.f32 %v489_v22, 0.0 }
  0xf1   : > { %v495_v31 = vmul.f32 %v494_v25, %v484_v34  ;;  %v496_v32 = vmul.f32 %v494_v25, %v485_v35  ;;  %v502_v33 = vmul.f32 %v494_v25, %v490_v36  ;;  %v503_v37 = vmul.f32 %v494_v25, %v491_v30 }
  0xf2   : > { %v545_v13 = vmul.f32 %v544_v3, %v484_v34  ;;  %v546_v14 = vmul.f32 %v544_v3, %v485_v35  ;;  %v551_v15 = vmul.f32 %v544_v3, %v490_v36  ;;  %v552_v16 = vmul.f32 %v544_v3, %v491_v30 }
  0xf3   : > { %v500_v38 = vsub.f32 %v495_v31, %v498_v26  ;;  %v501_v39 = vsub.f32 %v496_v32, %v499_v27  ;;  %v506_v40 = vsub.f32 %v502_v33, %v504_v28  ;;  %v507_v42 = vsub.f32 %v503_v37, %v505_v29 }
  0xf5   : > { %v509_v43 = vsub.f32 %v500_v38, %v506_v40  ;;  %v510_v44 = vsub.f32 %v501_v39, %v507_v42 }
  0xf7   : > { %v511_v45 = vmul.f32 %v1356_v49, %v509_v43  ;;  %v512_v46 = vmul.f32 %v1356_v49, %v510_v44 }
  0xf9   : > { %v513_v47 = vrot.slane %v511_v45, 7  ;;  %v514_v41 = vrot.slane %v512_v46, 7 }
  0xfb   : > { %v515_v48 = vsub.f32 %v511_v45, %v513_v47  ;;  %v516_v50 = vsub.f32 %v512_v46, %v514_v41 }
  0xfd   : > { %v517_v51 = vadd.f32 %v515_v48, %v1345_v17  ;;  %v518_v52 = vadd.f32 %v516_v50, %v1347_v18  ;;  %v591_v50 = vstv %s586_s11 }
  0xff   : > { %v519_v63 = vmul.f32 %v517_v51, %v1366_v59  ;;  %v520_v0 = vmul.f32 %v518_v52, %v1372_v62 }
 0x101   : > { %v521_v1 = vrot.slane %v519_v63, 1  ;;  %v522_v53 = vrot.slane %v520_v0, 1 }
 0x103   : > { %v523_v54 = vsub.f32 %v519_v63, %v521_v1  ;;  %v524_v55 = vsub.f32 %v520_v0, %v522_v53  ;;  %v588_v1 = vstv %s587_s12 }
 0x105   : > { %v525_v58 = vmul.f32 %v523_v54, %v1361_v56  ;;  %v526_v2 = vmul.f32 %v524_v55, %v1364_v57 }
 0x107   : > { %v527_v4 = vadd.f32 %v525_v58, %v500_v38  ;;  %v528_v5 = vadd.f32 %v526_v2, %v501_v39  ;;  %v533_v10 = vsub.f32 %v506_v40, %v525_v58  ;;  %v534_v11 = vsub.f32 %v507_v42, %v526_v2 }
 0x109   : > { %v529_v6 = vsub.f32 %v527_v4, %v1368_v60  ;;  %v530_v7 = vsub.f32 %v528_v5, %v1370_v61  ;;  %v535_v8 = vsub.f32 %v533_v10, %v1368_v60  ;;  %v536_v9 = vsub.f32 %v534_v11, %v1370_v61 }
 0x10b   : > { %v531_v23 = vmax.f32 %v529_v6, 0.0  ;;  %v532_v24 = vmax.f32 %v530_v7, 0.0  ;;  %v537_v25 = vmax.f32 %v535_v8, 0.0  ;;  %v538_v19 = vmax.f32 %v536_v9, 0.0 }
 0x10d   : > { %v542_v20 = vmul.f32 %v541_v12, %v531_v23  ;;  %v543_v21 = vmul.f32 %v541_v12, %v532_v24  ;;  %v549_v22 = vmul.f32 %v541_v12, %v537_v25  ;;  %v550_v26 = vmul.f32 %v541_v12, %v538_v19 }
 0x10e   : > { %v592_v2 = vmul.f32 %v591_v50, %v531_v23  ;;  %v593_v3 = vmul.f32 %v591_v50, %v532_v24  ;;  %v598_v4 = vmul.f32 %v591_v50, %v537_v25  ;;  %v599_v5 = vmul.f32 %v591_v50, %v538_v19 }
 0x10f   : > { %v547_v27 = vsub.f32 %v542_v20, %v545_v13  ;;  %v548_v28 = vsub.f32 %v543_v21, %v546_v14  ;;  %v553_v29 = vsub.f32 %v549_v22, %v551_v15  ;;  %v554_v31 = vsub.f32 %v550_v26, %v552_v16 }
 0x111   : > { %v556_v32 = vsub.f32 %v547_v27, %v553_v29  ;;  %v557_v33 = vsub.f32 %v548_v28, %v554_v31 }
 0x113   : > { %v558_v34 = vmul.f32 %v1356_v49, %v556_v32  ;;  %v559_v35 = vmul.f32 %v1356_v49, %v557_v33 }
 0x115   : > { %v560_v36 = vrot.slane %v558_v34, 7  ;;  %v561_v30 = vrot.slane %v559_v35, 7 }
 0x117   : > { %v562_v37 = vsub.f32 %v558_v34, %v560_v36  ;;  %v563_v38 = vsub.f32 %v559_v35, %v561_v30 }
 0x119   : > { %v564_v39 = vadd.f32 %v562_v37, %v1345_v17  ;;  %v565_v40 = vadd.f32 %v563_v38, %v1347_v18  ;;  %v638_v38 = vstv %s633_s13 }
 0x11b   : > { %v566_v42 = vmul.f32 %v564_v39, %v1366_v59  ;;  %v567_v43 = vmul.f32 %v565_v40, %v1372_v62 }
 0x11d   : > { %v568_v44 = vrot.slane %v566_v42, 1  ;;  %v569_v45 = vrot.slane %v567_v43, 1 }
 0x11f   : > { %v570_v46 = vsub.f32 %v566_v42, %v568_v44  ;;  %v571_v47 = vsub.f32 %v567_v43, %v569_v45  ;;  %v635_v44 = vstv %s634_s14 }
 0x121   : > { %v572_v41 = vmul.f32 %v570_v46, %v1361_v56  ;;  %v573_v48 = vmul.f32 %v571_v47, %v1364_v57 }
 0x123   : > { %v574_v51 = vadd.f32 %v572_v41, %v547_v27  ;;  %v575_v52 = vadd.f32 %v573_v48, %v548_v28  ;;  %v580_v63 = vsub.f32 %v553_v29, %v572_v41  ;;  %v581_v0 = vsub.f32 %v554_v31, %v573_v48 }
 0x125   : > { %v576_v53 = vsub.f32 %v574_v51, %v1368_v60  ;;  %v577_v54 = vsub.f32 %v575_v52, %v1370_v61  ;;  %v582_v55 = vsub.f32 %v580_v63, %v1368_v60  ;;  %v583_v58 = vsub.f32 %v581_v0, %v1370_v61 }
 0x127   : > { %v578_v10 = vmax.f32 %v576_v53, 0.0  ;;  %v579_v11 = vmax.f32 %v577_v54, 0.0  ;;  %v584_v12 = vmax.f32 %v582_v55, 0.0  ;;  %v585_v6 = vmax.f32 %v583_v58, 0.0 }
 0x129   : > { %v589_v7 = vmul.f32 %v588_v1, %v578_v10  ;;  %v590_v8 = vmul.f32 %v588_v1, %v579_v11  ;;  %v596_v9 = vmul.f32 %v588_v1, %v584_v12  ;;  %v597_v13 = vmul.f32 %v588_v1, %v585_v6 }
 0x12a   : > { %v639_v48 = vmul.f32 %v638_v38, %v578_v10  ;;  %v640_v50 = vmul.f32 %v638_v38, %v579_v11  ;;  %v645_v51 = vmul.f32 %v638_v38, %v584_v12  ;;  %v646_v52 = vmul.f32 %v638_v38, %v585_v6 }
 0x12b   : > { %v594_v14 = vsub.f32 %v589_v7, %v592_v2  ;;  %v595_v15 = vsub.f32 %v590_v8, %v593_v3  ;;  %v600_v16 = vsub.f32 %v596_v9, %v598_v4  ;;  %v601_v20 = vsub.f32 %v597_v13, %v599_v5 }
 0x12d   : > { %v603_v21 = vsub.f32 %v594_v14, %v600_v16  ;;  %v604_v22 = vsub.f32 %v595_v15, %v601_v20 }
 0x12f   : > { %v605_v23 = vmul.f32 %v1356_v49, %v603_v21  ;;  %v606_v24 = vmul.f32 %v1356_v49, %v604_v22 }
 0x131   : > { %v607_v25 = vrot.slane %v605_v23, 7  ;;  %v608_v19 = vrot.slane %v606_v24, 7 }
 0x133   : > { %v609_v26 = vsub.f32 %v605_v23, %v607_v25  ;;  %v610_v27 = vsub.f32 %v606_v24, %v608_v19 }
 0x135   : > { %v611_v28 = vadd.f32 %v609_v26, %v1345_v17  ;;  %v612_v29 = vadd.f32 %v610_v27, %v1347_v18  ;;  %v685_v27 = vstv %s680_s16 }
 0x137   : > { %v613_v31 = vmul.f32 %v611_v28, %v1366_v59  ;;  %v614_v32 = vmul.f32 %v612_v29, %v1372_v62 }
 0x139   : > { %v615_v33 = vrot.slane %v613_v31, 1  ;;  %v616_v34 = vrot.slane %v614_v32, 1 }
 0x13b   : > { %v617_v35 = vsub.f32 %v613_v31, %v615_v33  ;;  %v618_v36 = vsub.f32 %v614_v32, %v616_v34  ;;  %v682_v33 = vstv %s681_s17 }
 0x13d   : > { %v619_v30 = vmul.f32 %v617_v35, %v1361_v56  ;;  %v620_v37 = vmul.f32 %v618_v36, %v1364_v57 }
 0x13f   : > { %v621_v39 = vadd.f32 %v619_v30, %v594_v14  ;;  %v622_v40 = vadd.f32 %v620_v37, %v595_v15  ;;  %v627_v42 = vsub.f32 %v600_v16, %v619_v30  ;;  %v628_v43 = vsub.f32 %v601_v20, %v620_v37 }
 0x141   : > { %v623_v45 = vsub.f32 %v621_v39, %v1368_v60  ;;  %v624_v46 = vsub.f32 %v622_v40, %v1370_v61  ;;  %v629_v47 = vsub.f32 %v627_v42, %v1368_v60  ;;  %v630_v41 = vsub.f32 %v628_v43, %v1370_v61 }
 0x143   : > { %v625_v63 = vmax.f32 %v623_v45, 0.0  ;;  %v626_v0 = vmax.f32 %v624_v46, 0.0  ;;  %v631_v1 = vmax.f32 %v629_v47, 0.0  ;;  %v632_v53 = vmax.f32 %v630_v41, 0.0 }
 0x145   : > { %v636_v54 = vmul.f32 %v635_v44, %v625_v63  ;;  %v637_v55 = vmul.f32 %v635_v44, %v626_v0  ;;  %v643_v58 = vmul.f32 %v635_v44, %v631_v1  ;;  %v644_v2 = vmul.f32 %v635_v44, %v632_v53 }
 0x146   : > { %v686_v37 = vmul.f32 %v685_v27, %v625_v63  ;;  %v687_v38 = vmul.f32 %v685_v27, %v626_v0  ;;  %v692_v39 = vmul.f32 %v685_v27, %v631_v1  ;;  %v693_v40 = vmul.f32 %v685_v27, %v632_v53 }
 0x147   : > { %v641_v3 = vsub.f32 %v636_v54, %v639_v48  ;;  %v642_v4 = vsub.f32 %v637_v55, %v640_v50  ;;  %v647_v5 = vsub.f32 %v643_v58, %v645_v51  ;;  %v648_v7 = vsub.f32 %v644_v2, %v646_v52 }
 0x149   : > { %v650_v8 = vsub.f32 %v641_v3, %v647_v5  ;;  %v651_v9 = vsub.f32 %v642_v4, %v648_v7 }
 0x14b   : > { %v652_v10 = vmul.f32 %v1356_v49, %v650_v8  ;;  %v653_v11 = vmul.f32 %v1356_v49, %v651_v9 }
 0x14d   : > { %v654_v12 = vrot.slane %v652_v10, 7  ;;  %v655_v6 = vrot.slane %v653_v11, 7 }
 0x14f   : > { %v656_v13 = vsub.f32 %v652_v10, %v654_v12  ;;  %v657_v14 = vsub.f32 %v653_v11, %v655_v6 }
 0x151   : > { %v658_v15 = vadd.f32 %v656_v13, %v1345_v17  ;;  %v659_v16 = vadd.f32 %v657_v14, %v1347_v18  ;;  %v732_v14 = vstv %s727_s19 }
 0x153   : > { %v660_v20 = vmul.f32 %v658_v15, %v1366_v59  ;;  %v661_v21 = vmul.f32 %v659_v16, %v1372_v62 }
 0x155   : > { %v662_v22 = vrot.slane %v660_v20, 1  ;;  %v663_v23 = vrot.slane %v661_v21, 1 }
 0x157   : > { %v664_v24 = vsub.f32 %v660_v20, %v662_v22  ;;  %v665_v25 = vsub.f32 %v661_v21, %v663_v23  ;;  %v729_v22 = vstv %s728_s20 }
 0x159   : > { %v666_v19 = vmul.f32 %v664_v24, %v1361_v56  ;;  %v667_v26 = vmul.f32 %v665_v25, %v1364_v57 }
 0x15b   : > { %v668_v28 = vadd.f32 %v666_v19, %v641_v3  ;;  %v669_v29 = vadd.f32 %v667_v26, %v642_v4  ;;  %v674_v31 = vsub.f32 %v647_v5, %v666_v19  ;;  %v675_v32 = vsub.f32 %v648_v7, %v667_v26 }
 0x15d   : > { %v670_v34 = vsub.f32 %v668_v28, %v1368_v60  ;;  %v671_v35 = vsub.f32 %v669_v29, %v1370_v61  ;;  %v676_v36 = vsub.f32 %v674_v31, %v1368_v60  ;;  %v677_v30 = vsub.f32 %v675_v32, %v1370_v61 }
 0x15f   : > { %v672_v42 = vmax.f32 %v670_v34, 0.0  ;;  %v673_v43 = vmax.f32 %v671_v35, 0.0  ;;  %v678_v44 = vmax.f32 %v676_v36, 0.0  ;;  %v679_v45 = vmax.f32 %v677_v30, 0.0 }
 0x161   : > { %v683_v46 = vmul.f32 %v682_v33, %v672_v42  ;;  %v684_v47 = vmul.f32 %v682_v33, %v673_v43  ;;  %v690_v41 = vmul.f32 %v682_v33, %v678_v44  ;;  %v691_v48 = vmul.f32 %v682_v33, %v679_v45 }
 0x162   : > { %v733_v26 = vmul.f32 %v732_v14, %v672_v42  ;;  %v734_v27 = vmul.f32 %v732_v14, %v673_v43  ;;  %v739_v28 = vmul.f32 %v732_v14, %v678_v44  ;;  %v740_v29 = vmul.f32 %v732_v14, %v679_v45 }
 0x163   : > { %v688_v50 = vsub.f32 %v683_v46, %v686_v37  ;;  %v689_v51 = vsub.f32 %v684_v47, %v687_v38  ;;  %v694_v52 = vsub.f32 %v690_v41, %v692_v39  ;;  %v695_v54 = vsub.f32 %v691_v48, %v693_v40 }
 0x165   : > { %v697_v55 = vsub.f32 %v688_v50, %v694_v52  ;;  %v698_v58 = vsub.f32 %v689_v51, %v695_v54 }
 0x167   : > { %v699_v63 = vmul.f32 %v1356_v49, %v697_v55  ;;  %v700_v0 = vmul.f32 %v1356_v49, %v698_v58 }
 0x169   : > { %v701_v1 = vrot.slane %v699_v63, 7  ;;  %v702_v53 = vrot.slane %v700_v0, 7 }
 0x16b   : > { %v703_v2 = vsub.f32 %v699_v63, %v701_v1  ;;  %v704_v3 = vsub.f32 %v700_v0, %v702_v53 }
 0x16d   : > { %v705_v4 = vadd.f32 %v703_v2, %v1345_v17  ;;  %v706_v5 = vadd.f32 %v704_v3, %v1347_v18  ;;  %v779_v3 = vstv %s774_s22 }
 0x16f   : > { %v707_v7 = vmul.f32 %v705_v4, %v1366_v59  ;;  %v708_v8 = vmul.f32 %v706_v5, %v1372_v62 }
 0x171   : > { %v709_v9 = vrot.slane %v707_v7, 1  ;;  %v710_v10 = vrot.slane %v708_v8, 1 }
 0x173   : > { %v711_v11 = vsub.f32 %v707_v7, %v709_v9  ;;  %v712_v12 = vsub.f32 %v708_v8, %v710_v10  ;;  %v776_v9 = vstv %s775_s23 }
 0x175   : > { %v713_v6 = vmul.f32 %v711_v11, %v1361_v56  ;;  %v714_v13 = vmul.f32 %v712_v12, %v1364_v57 }
 0x177   : > { %v715_v15 = vadd.f32 %v713_v6, %v688_v50  ;;  %v716_v16 = vadd.f32 %v714_v13, %v689_v51  ;;  %v721_v20 = vsub.f32 %v694_v52, %v713_v6  ;;  %v722_v21 = vsub.f32 %v695_v54, %v714_v13 }
 0x179   : > { %v717_v23 = vsub.f32 %v715_v15, %v1368_v60  ;;  %v718_v24 = vsub.f32 %v716_v16, %v1370_v61  ;;  %v723_v25 = vsub.f32 %v721_v20, %v1368_v60  ;;  %v724_v19 = vsub.f32 %v722_v21, %v1370_v61 }
 0x17b   : > { %v719_v31 = vmax.f32 %v717_v23, 0.0  ;;  %v720_v32 = vmax.f32 %v718_v24, 0.0  ;;  %v725_v33 = vmax.f32 %v723_v25, 0.0  ;;  %v726_v34 = vmax.f32 %v724_v19, 0.0 }
 0x17d   : > { %v730_v35 = vmul.f32 %v729_v22, %v719_v31  ;;  %v731_v36 = vmul.f32 %v729_v22, %v720_v32  ;;  %v737_v30 = vmul.f32 %v729_v22, %v725_v33  ;;  %v738_v37 = vmul.f32 %v729_v22, %v726_v34 }
 0x17e   : > { %v780_v13 = vmul.f32 %v779_v3, %v719_v31  ;;  %v781_v14 = vmul.f32 %v779_v3, %v720_v32  ;;  %v786_v15 = vmul.f32 %v779_v3, %v725_v33  ;;  %v787_v16 = vmul.f32 %v779_v3, %v726_v34 }
 0x17f   : > { %v735_v38 = vsub.f32 %v730_v35, %v733_v26  ;;  %v736_v39 = vsub.f32 %v731_v36, %v734_v27  ;;  %v741_v40 = vsub.f32 %v737_v30, %v739_v28  ;;  %v742_v46 = vsub.f32 %v738_v37, %v740_v29 }
 0x181   : > { %v744_v47 = vsub.f32 %v735_v38, %v741_v40  ;;  %v745_v41 = vsub.f32 %v736_v39, %v742_v46 }
 0x183   : > { %v746_v42 = vmul.f32 %v1356_v49, %v744_v47  ;;  %v747_v43 = vmul.f32 %v1356_v49, %v745_v41 }
 0x185   : > { %v748_v44 = vrot.slane %v746_v42, 7  ;;  %v749_v45 = vrot.slane %v747_v43, 7 }
 0x187   : > { %v750_v48 = vsub.f32 %v746_v42, %v748_v44  ;;  %v751_v50 = vsub.f32 %v747_v43, %v749_v45 }
 0x189   : > { %v752_v51 = vadd.f32 %v750_v48, %v1345_v17  ;;  %v753_v52 = vadd.f32 %v751_v50, %v1347_v18  ;;  %v826_v50 = vstv %s821_s25 }
 0x18b   : > { %v754_v54 = vmul.f32 %v752_v51, %v1366_v59  ;;  %v755_v55 = vmul.f32 %v753_v52, %v1372_v62 }
 0x18d   : > { %v756_v58 = vrot.slane %v754_v54, 1  ;;  %v757_v63 = vrot.slane %v755_v55, 1 }
 0x18f   : > { %v758_v0 = vsub.f32 %v754_v54, %v756_v58  ;;  %v759_v1 = vsub.f32 %v755_v55, %v757_v63  ;;  %v823_v58 = vstv %s822_s26 }
 0x191   : > { %v760_v53 = vmul.f32 %v758_v0, %v1361_v56  ;;  %v761_v2 = vmul.f32 %v759_v1, %v1364_v57 }
 0x193   : > { %v762_v4 = vadd.f32 %v760_v53, %v735_v38  ;;  %v763_v5 = vadd.f32 %v761_v2, %v736_v39  ;;  %v768_v7 = vsub.f32 %v741_v40, %v760_v53  ;;  %v769_v8 = vsub.f32 %v742_v46, %v761_v2 }
 0x195   : > { %v764_v10 = vsub.f32 %v762_v4, %v1368_v60  ;;  %v765_v11 = vsub.f32 %v763_v5, %v1370_v61  ;;  %v770_v12 = vsub.f32 %v768_v7, %v1368_v60  ;;  %v771_v6 = vsub.f32 %v769_v8, %v1370_v61 }
 0x197   : > { %v766_v20 = vmax.f32 %v764_v10, 0.0  ;;  %v767_v21 = vmax.f32 %v765_v11, 0.0  ;;  %v772_v22 = vmax.f32 %v770_v12, 0.0  ;;  %v773_v23 = vmax.f32 %v771_v6, 0.0 }
 0x199   : > { %v777_v24 = vmul.f32 %v776_v9, %v766_v20  ;;  %v778_v25 = vmul.f32 %v776_v9, %v767_v21  ;;  %v784_v19 = vmul.f32 %v776_v9, %v772_v22  ;;  %v785_v26 = vmul.f32 %v776_v9, %v773_v23 }
 0x19a   : > { %v827_v2 = vmul.f32 %v826_v50, %v766_v20  ;;  %v828_v3 = vmul.f32 %v826_v50, %v767_v21  ;;  %v833_v4 = vmul.f32 %v826_v50, %v772_v22  ;;  %v834_v5 = vmul.f32 %v826_v50, %v773_v23 }
 0x19b   : > { %v782_v27 = vsub.f32 %v777_v24, %v780_v13  ;;  %v783_v28 = vsub.f32 %v778_v25, %v781_v14  ;;  %v788_v29 = vsub.f32 %v784_v19, %v786_v15  ;;  %v789_v35 = vsub.f32 %v785_v26, %v787_v16 }
 0x19d   : > { %v791_v36 = vsub.f32 %v782_v27, %v788_v29  ;;  %v792_v30 = vsub.f32 %v783_v28, %v789_v35 }
 0x19f   : > { %v793_v31 = vmul.f32 %v1356_v49, %v791_v36  ;;  %v794_v32 = vmul.f32 %v1356_v49, %v792_v30 }
 0x1a1   : > { %v795_v33 = vrot.slane %v793_v31, 7  ;;  %v796_v34 = vrot.slane %v794_v32, 7 }
 0x1a3   : > { %v797_v37 = vsub.f32 %v793_v31, %v795_v33  ;;  %v798_v38 = vsub.f32 %v794_v32, %v796_v34 }
 0x1a5   : > { %v799_v39 = vadd.f32 %v797_v37, %v1345_v17  ;;  %v800_v40 = vadd.f32 %v798_v38, %v1347_v18  ;;  %v873_v38 = vstv %s868_s28 }
 0x1a7   : > { %v801_v46 = vmul.f32 %v799_v39, %v1366_v59  ;;  %v802_v47 = vmul.f32 %v800_v40, %v1372_v62 }
 0x1a9   : > { %v803_v41 = vrot.slane %v801_v46, 1  ;;  %v804_v42 = vrot.slane %v802_v47, 1 }
 0x1ab   : > { %v805_v43 = vsub.f32 %v801_v46, %v803_v41  ;;  %v806_v44 = vsub.f32 %v802_v47, %v804_v42  ;;  %v870_v41 = vstv %s869_s29 }
 0x1ad   : > { %v807_v45 = vmul.f32 %v805_v43, %v1361_v56  ;;  %v808_v48 = vmul.f32 %v806_v44, %v1364_v57 }
 0x1af   : > { %v809_v51 = vadd.f32 %v807_v45, %v782_v27  ;;  %v810_v52 = vadd.f32 %v808_v48, %v783_v28  ;;  %v815_v54 = vsub.f32 %v788_v29, %v807_v45  ;;  %v816_v55 = vsub.f32 %v789_v35, %v808_v48 }
 0x1b1   : > { %v811_v63 = vsub.f32 %v809_v51, %v1368_v60  ;;  %v812_v0 = vsub.f32 %v810_v52, %v1370_v61  ;;  %v817_v1 = vsub.f32 %v815_v54, %v1368_v60  ;;  %v818_v53 = vsub.f32 %v816_v55, %v1370_v61 }
 0x1b3   : > { %v813_v7 = vmax.f32 %v811_v63, 0.0  ;;  %v814_v8 = vmax.f32 %v812_v0, 0.0  ;;  %v819_v9 = vmax.f32 %v817_v1, 0.0  ;;  %v820_v10 = vmax.f32 %v818_v53, 0.0 }
 0x1b5   : > { %v824_v11 = vmul.f32 %v823_v58, %v813_v7  ;;  %v825_v12 = vmul.f32 %v823_v58, %v814_v8  ;;  %v831_v6 = vmul.f32 %v823_v58, %v819_v9  ;;  %v832_v13 = vmul.f32 %v823_v58, %v820_v10 }
 0x1b6   : > { %v874_v48 = vmul.f32 %v873_v38, %v813_v7  ;;  %v875_v50 = vmul.f32 %v873_v38, %v814_v8  ;;  %v880_v51 = vmul.f32 %v873_v38, %v819_v9  ;;  %v881_v52 = vmul.f32 %v873_v38, %v820_v10 }
 0x1b7   : > { %v829_v14 = vsub.f32 %v824_v11, %v827_v2  ;;  %v830_v15 = vsub.f32 %v825_v12, %v828_v3  ;;  %v835_v16 = vsub.f32 %v831_v6, %v833_v4  ;;  %v836_v24 = vsub.f32 %v832_v13, %v834_v5 }
 0x1b9   : > { %v838_v25 = vsub.f32 %v829_v14, %v835_v16  ;;  %v839_v19 = vsub.f32 %v830_v15, %v836_v24 }
 0x1bb   : > { %v840_v20 = vmul.f32 %v1356_v49, %v838_v25  ;;  %v841_v21 = vmul.f32 %v1356_v49, %v839_v19 }
 0x1bd   : > { %v842_v22 = vrot.slane %v840_v20, 7  ;;  %v843_v23 = vrot.slane %v841_v21, 7 }
 0x1bf   : > { %v844_v26 = vsub.f32 %v840_v20, %v842_v22  ;;  %v845_v27 = vsub.f32 %v841_v21, %v843_v23 }
 0x1c1   : > { %v846_v28 = vadd.f32 %v844_v26, %v1345_v17  ;;  %v847_v29 = vadd.f32 %v845_v27, %v1347_v18  ;;  %v920_v27 = vstv %s915_s2 }
 0x1c3   : > { %v848_v35 = vmul.f32 %v846_v28, %v1366_v59  ;;  %v849_v36 = vmul.f32 %v847_v29, %v1372_v62 }
 0x1c5   : > { %v850_v30 = vrot.slane %v848_v35, 1  ;;  %v851_v31 = vrot.slane %v849_v36, 1 }
 0x1c7   : > { %v852_v32 = vsub.f32 %v848_v35, %v850_v30  ;;  %v853_v33 = vsub.f32 %v849_v36, %v851_v31  ;;  %v917_v30 = vstv %s916_s6 }
 0x1c9   : > { %v854_v34 = vmul.f32 %v852_v32, %v1361_v56  ;;  %v855_v37 = vmul.f32 %v853_v33, %v1364_v57 }
 0x1cb   : > { %v856_v39 = vadd.f32 %v854_v34, %v829_v14  ;;  %v857_v40 = vadd.f32 %v855_v37, %v830_v15  ;;  %v862_v46 = vsub.f32 %v835_v16, %v854_v34  ;;  %v863_v47 = vsub.f32 %v836_v24, %v855_v37 }
 0x1cd   : > { %v858_v42 = vsub.f32 %v856_v39, %v1368_v60  ;;  %v859_v43 = vsub.f32 %v857_v40, %v1370_v61  ;;  %v864_v44 = vsub.f32 %v862_v46, %v1368_v60  ;;  %v865_v45 = vsub.f32 %v863_v47, %v1370_v61 }
 0x1cf   : > { %v860_v54 = vmax.f32 %v858_v42, 0.0  ;;  %v861_v55 = vmax.f32 %v859_v43, 0.0  ;;  %v866_v58 = vmax.f32 %v864_v44, 0.0  ;;  %v867_v63 = vmax.f32 %v865_v45, 0.0 }
 0x1d1   : > { %v871_v0 = vmul.f32 %v870_v41, %v860_v54  ;;  %v872_v1 = vmul.f32 %v870_v41, %v861_v55  ;;  %v878_v53 = vmul.f32 %v870_v41, %v866_v58  ;;  %v879_v2 = vmul.f32 %v870_v41, %v867_v63 }
 0x1d2   : > { %v921_v37 = vmul.f32 %v920_v27, %v860_v54  ;;  %v922_v38 = vmul.f32 %v920_v27, %v861_v55  ;;  %v927_v39 = vmul.f32 %v920_v27, %v866_v58  ;;  %v928_v40 = vmul.f32 %v920_v27, %v867_v63 }
 0x1d3   : > { %v876_v3 = vsub.f32 %v871_v0, %v874_v48  ;;  %v877_v4 = vsub.f32 %v872_v1, %v875_v50  ;;  %v882_v5 = vsub.f32 %v878_v53, %v880_v51  ;;  %v883_v11 = vsub.f32 %v879_v2, %v881_v52 }
 0x1d5   : > { %v885_v12 = vsub.f32 %v876_v3, %v882_v5  ;;  %v886_v6 = vsub.f32 %v877_v4, %v883_v11 }
 0x1d7   : > { %v887_v7 = vmul.f32 %v1356_v49, %v885_v12  ;;  %v888_v8 = vmul.f32 %v1356_v49, %v886_v6 }
 0x1d9   : > { %v889_v9 = vrot.slane %v887_v7, 7  ;;  %v890_v10 = vrot.slane %v888_v8, 7 }
 0x1db   : > { %v891_v13 = vsub.f32 %v887_v7, %v889_v9  ;;  %v892_v14 = vsub.f32 %v888_v8, %v890_v10 }
 0x1dd   : > { %v893_v15 = vadd.f32 %v891_v13, %v1345_v17  ;;  %v894_v16 = vadd.f32 %v892_v14, %v1347_v18 }
 0x1df   : > { %v895_v24 = vmul.f32 %v893_v15, %v1366_v59  ;;  %v896_v25 = vmul.f32 %v894_v16, %v1372_v62 }
 0x1e1   : > { %v897_v19 = vrot.slane %v895_v24, 1  ;;  %v898_v20 = vrot.slane %v896_v25, 1 }
 0x1e3   : > { %v899_v21 = vsub.f32 %v895_v24, %v897_v19  ;;  %v900_v22 = vsub.f32 %v896_v25, %v898_v20 }
 0x1e5   : > { %v901_v23 = vmul.f32 %v899_v21, %v1361_v56  ;;  %v902_v26 = vmul.f32 %v900_v22, %v1364_v57 }
 0x1e7   : > { %v903_v28 = vadd.f32 %v901_v23, %v876_v3  ;;  %v904_v29 = vadd.f32 %v902_v26, %v877_v4  ;;  %v909_v35 = vsub.f32 %v882_v5, %v901_v23  ;;  %v910_v36 = vsub.f32 %v883_v11, %v902_v26 }
 0x1e9   : > { %v905_v31 = vsub.f32 %v903_v28, %v1368_v60  ;;  %v906_v32 = vsub.f32 %v904_v29, %v1370_v61  ;;  %v911_v33 = vsub.f32 %v909_v35, %v1368_v60  ;;  %v912_v34 = vsub.f32 %v910_v36, %v1370_v61 }
 0x1eb   : > { %v907_v46 = vmax.f32 %v905_v31, 0.0   ;;  %v908_v47 = vmax.f32 %v906_v32, 0.0   ;;  %v913_v41 = vmax.f32 %v911_v33, 0.0   ;;  %v914_v42 = vmax.f32 %v912_v34, 0.0   ;;  %169 = sbr.rel (!%p167_p0) target bundleno = 49 (0x31), region = 67 }
 0x1ed   : > { %v918_v43 = vmul.f32 %v917_v30, %v907_v46  ;;  %v919_v44 = vmul.f32 %v917_v30, %v908_v47  ;;  %v925_v45 = vmul.f32 %v917_v30, %v913_v41  ;;  %v926_v48 = vmul.f32 %v917_v30, %v914_v42 }
 0x1ee   : > { %v1650_v3 = vmov %v914_v42  ;;  %v1651_v4 = vmov %v913_v41  ;;  %v1652_v5 = vmov %v908_v47  ;;  %v1653_v6 = vmov %v907_v46 }
 0x1ef   : > { %v923_v2 = vsub.f32 %v918_v43, %v921_v37   ;;  %v924_v1 = vsub.f32 %v919_v44, %v922_v38   ;;  %v929_v0 = vsub.f32 %v925_v45, %v927_v39   ;;  %v930_v63 = vsub.f32 %v926_v48, %v928_v40  }
 0x1f0   :  { %v931_v50 = vsub.f32 %v907_v46, %v913_v41  ;;  %v932_v51 = vsub.f32 %v908_v47, %v914_v42 }
 0x1f2   :  { %v933_v52 = vmul.f32 %v1356_v49, %v931_v50  ;;  %v934_v54 = vmul.f32 %v1356_v49, %v932_v51 }
 0x1f4   :  { %v935_v55 = vrot.slane %v933_v52, 7  ;;  %v936_v58 = vrot.slane %v934_v54, 7 }
 0x1f6   :  { %v937_v53 = vsub.f32 %v933_v52, %v935_v55  ;;  %v938_v11 = vsub.f32 %v934_v54, %v936_v58 }
 0x1f8   :  { %v939_v12 = vadd.f32 %v937_v53, %v1345_v17  ;;  %v940_v6 = vadd.f32 %v938_v11, %v1347_v18 }
 0x1fa   :  { %v941_v56 = vmul.f32 %v939_v12, %v1366_v59  ;;  %v942_v57 = vmul.f32 %v940_v6, %v1372_v62 }
 0x1fc   :  { %943 = vst [vmem:[#allocation12] sm:$0xff] %v941_v56 }
 0x1fd   :  { %944 = vst [vmem:[#allocation12 + $0x8] sm:$0xff] %v942_v57 }
 0x1fe   :  { %955 = dma.vmem_to_hbm [thread:$0]  %s951_s7, 256, %s953_s3, [#allocation4]  }
 0x1ff   :  { %1255 = dma.done.wait [#allocation4], 256  }
 0x200   :  { %1256 = vsyncadd [#allocation4], 4294967040 }
 0x201   :  { %960 = vsyncpa [#allocation3], 1 }
 0x202   :  { %961 = vsyncpa [#allocation8], 1 }
 0x203   :  { %962 = vsyncpa [#allocation11], 1 }
 0x204   :  { %963 = vsyncpa [#allocation4], 1 }
 0x205   :  { %964 = vsyncpa [#allocation5], 1 }

</bundles_post_ra>
